<compile_context>
chip_gen: v5e
topology: v5e:2x2
jax: 0.10.0
libtpu: 0.0.40
codegen_flags: <defaults>
</compile_context>

<pallas_src>
import functools
import numpy as np
import jax
import jax.numpy as jnp
from jax.experimental import pallas as pl
from jax.experimental.pallas import tpu as pltpu

FF_DIM = 2048            # torch.nn.TransformerDecoderLayer default dim_feedforward
LN_EPS = 1e-5            # torch.nn.LayerNorm default eps
WEIGHT_DTYPE = jnp.bfloat16


# ---------------------------------------------------------------------------
# in-kernel math helpers
# ---------------------------------------------------------------------------
def _mm(x, w):
    """y = x @ w with bf16 operands and f32 accumulation. w: (in, out)."""
    return jax.lax.dot_general(x.astype(w.dtype), w,
                               (((1,), (0,)), ((), ())),
                               preferred_element_type=jnp.float32)


def _layer_norm(x, w, b, eps=LN_EPS):
    """Single-pass LayerNorm: one pass produces E[x] and E[x^2]."""
    mu = jnp.mean(x, axis=-1, keepdims=True)
    msq = jnp.mean(x * x, axis=-1, keepdims=True)
    var = jnp.maximum(msq - mu * mu, 0.0)
    return (x - mu) * jax.lax.rsqrt(var + eps) * w + b


def _mha(q_in, kv_in, wq, wk, wv, wo, bq, bk, bv, bo, num_heads):
    """Multi-head attention with fused full-width projections.

    q_in : (Q, D) f32, kv_in : (S, D) f32
    wq/wk/wv/wo : (D, D) bf16 in x@W orientation; 1/sqrt(hd) pre-folded into wq.
    bq/bk/bv/bo : (1, D) f32 (bq pre-scaled).
    """
    D = q_in.shape[-1]
    hd = D // num_heads

    q = _mm(q_in, wq) + bq            # (Q, D)  (already scaled)
    k = _mm(kv_in, wk) + bk           # (S, D)
    v = _mm(kv_in, wv) + bv           # (S, D)

    qb = q.astype(jnp.bfloat16)
    kb = k.astype(jnp.bfloat16)
    vb = v.astype(jnp.bfloat16)

    heads = []
    for h in range(num_heads):        # static unroll; slices are static lane slices
        sl = slice(h * hd, (h + 1) * hd)
        s = jax.lax.dot_general(qb[:, sl], kb[:, sl],
                                (((1,), (1,)), ((), ())),
                                preferred_element_type=jnp.float32)    # (Q, S)
        s = s - jnp.max(s, axis=-1, keepdims=True)
        p = jnp.exp(s)
        p = p * pl.reciprocal(jnp.sum(p, axis=-1, keepdims=True), approx=True)
        heads.append(jax.lax.dot_general(p.astype(jnp.bfloat16), vb[:, sl],
                                         (((1,), (0,)), ((), ())),
                                         preferred_element_type=jnp.float32))  # (Q, hd)

    o = jnp.concatenate(heads, axis=-1)      # (Q, D) head concat (lane dim)
    return _mm(o, wo) + bo                   # single (Q,D)@(D,D) out projection


# ---------------------------------------------------------------------------
# Pallas kernel: one (batch element, decoder layer) per grid step
# ---------------------------------------------------------------------------
def _detr_layer_kernel(tgt_ref, mem_ref, w_attn_ref, w1_ref, w2_ref, b1_ref,
                       vecs_ref, out_ref, *, num_heads):
    l = pl.program_id(1)

    # Initialize the resident carry (output block) with the learned queries.
    @pl.when(l == 0)
    def _():
        out_ref[0] = tgt_ref[0]

    x = out_ref[0]                    # (Q, D) f32, carried across layers in VMEM
    mem = mem_ref[0]                  # (S, D) f32, resident across layers per batch
    vecs = vecs_ref[0]                # (15, D) f32
    # vecs rows: [sa_bq, sa_bk, sa_bv, sa_bo, ca_bq, ca_bk, ca_bv, ca_bo,
    #             lin2_b, n1w, n1b, n2w, n2b, n3w, n3b]

    # --- self attention + residual + post-norm ---
    sa = _mha(x, x,
              w_attn_ref[0, 0], w_attn_ref[0, 1], w_attn_ref[0, 2], w_attn_ref[0, 3],
              vecs[0:1], vecs[1:2], vecs[2:3], vecs[3:4], num_heads)
    x = _layer_norm(x + sa, vecs[9:10], vecs[10:11])

    # --- cross attention against the flattened memory ---
    ca = _mha(x, mem,
              w_attn_ref[0, 4], w_attn_ref[0, 5], w_attn_ref[0, 6], w_attn_ref[0, 7],
              vecs[4:5], vecs[5:6], vecs[6:7], vecs[7:8], num_heads)
    x = _layer_norm(x + ca, vecs[11:12], vecs[12:13])

    # --- feed forward (ReLU, dropout=0) ---
    h = jnp.maximum(_mm(x, w1_ref[0]) + b1_ref[0], 0.0)
    ff = _mm(h, w2_ref[0]) + vecs[8:9]
    x = _layer_norm(x + ff, vecs[13:14], vecs[14:15])

    out_ref[0] = x


# ---------------------------------------------------------------------------
# wrapper: pack torch-convention params -> layer-streamed kernel layout
# ---------------------------------------------------------------------------
def _pack_params(layer_params, num_heads, wdtype=WEIGHT_DTYPE):
    w_attn_l, w1_l, w2_l, b1_l, vecs_l = [], [], [], [], []
    for p in layer_params:
        (sa_in_w, sa_in_b, sa_out_w, sa_out_b,
         ca_in_w, ca_in_b, ca_out_w, ca_out_b,
         lin1_w, lin1_b, lin2_w, lin2_b,
         n1_w, n1_b, n2_w, n2_b, n3_w, n3_b) = p
        D = sa_out_w.shape[0]
        hd = D // num_heads
        scale = 1.0 / float(np.sqrt(hd))

        def split_qkv(in_w, in_b):   # (3D, D)/(1, 3D) -> x@W weights, scale folded into q
            wq = in_w[0:D].T * scale
            wk = in_w[D:2 * D].T
            wv = in_w[2 * D:3 * D].T
            bq = in_b[:, 0:D] * scale
            bk = in_b[:, D:2 * D]
            bv = in_b[:, 2 * D:3 * D]
            return (wq, wk, wv), (bq, bk, bv)

        (sa_wq, sa_wk, sa_wv), (sa_bq, sa_bk, sa_bv) = split_qkv(sa_in_w, sa_in_b)
        (ca_wq, ca_wk, ca_wv), (ca_bq, ca_bk, ca_bv) = split_qkv(ca_in_w, ca_in_b)

        w_attn = jnp.stack([sa_wq, sa_wk, sa_wv, sa_out_w.T,
                            ca_wq, ca_wk, ca_wv, ca_out_w.T])         # (8, D, D)
        vecs = jnp.concatenate(
            [sa_bq, sa_bk, sa_bv, sa_out_b,
             ca_bq, ca_bk, ca_bv, ca_out_b,
             lin2_b, n1_w, n1_b, n2_w, n2_b, n3_w, n3_b], axis=0)     # (15, D) f32

        w_attn_l.append(w_attn.astype(wdtype))
        w1_l.append(lin1_w.T.astype(wdtype))                          # (D, FF)
        w2_l.append(lin2_w.T.astype(wdtype))                          # (FF, D)
        b1_l.append(lin1_b)                                           # (1, FF) f32
        vecs_l.append(vecs)

    return (jnp.stack(w_attn_l), jnp.stack(w1_l), jnp.stack(w2_l),
            jnp.stack(b1_l), jnp.stack(vecs_l))


def detr_query_forward(x, query_embed, layer_params, num_heads, input_dim):
    B = x.shape[0]
    mem = x.reshape(B, -1, input_dim).astype(jnp.float32)     # x.view(B, -1, D)
    Q, D = query_embed.shape[1], query_embed.shape[2]
    S = mem.shape[1]
    L = len(layer_params)

    w_attn, w1, w2, b1, vecs = _pack_params(layer_params, num_heads)
    FF = w1.shape[-1]

    kernel = functools.partial(_detr_layer_kernel, num_heads=num_heads)

    return pl.pallas_call(
        kernel,
        out_shape=jax.ShapeDtypeStruct((B, Q, D), jnp.float32),
        grid=(B, L),
        in_specs=[
            # learned queries: shared across batch, resident across the whole grid
            pl.BlockSpec((1, Q, D), lambda b, l: (0, 0, 0)),
            # flattened memory: per batch element, resident across layers
            pl.BlockSpec((1, S, D), lambda b, l: (b, 0, 0)),
            # per-layer parameters: streamed (double-buffered) along the layer axis
            pl.BlockSpec((1, 8, D, D), lambda b, l: (l, 0, 0, 0)),
            pl.BlockSpec((1, D, FF), lambda b, l: (l, 0, 0)),
            pl.BlockSpec((1, FF, D), lambda b, l: (l, 0, 0)),
            pl.BlockSpec((1, 1, FF), lambda b, l: (l, 0, 0)),
            pl.BlockSpec((1, 15, D), lambda b, l: (l, 0, 0)),
        ],
        out_specs=pl.BlockSpec((1, Q, D), lambda b, l: (b, 0, 0)),
        compiler_params=pltpu.CompilerParams(
            dimension_semantics=("parallel", "arbitrary"),
            vmem_limit_bytes=48 * 1024 * 1024),
    )(query_embed.astype(jnp.float32), mem, w_attn, w1, w2, b1, vecs)


# ---------------------------------------------------------------------------
# pure-JAX f32 reference (torch-convention math, per-batch / per-head loops)
# ---------------------------------------------------------------------------
def _linear(x, w, b=None):
    y = jax.lax.dot_general(x, w, (((1,), (1,)), ((), ())),
                            preferred_element_type=jnp.float32)
    return y if b is None else y + b


def _layer_norm_ref(x, w, b, eps=LN_EPS):
    mu = jnp.mean(x, axis=-1, keepdims=True)
    var = jnp.mean((x - mu) ** 2, axis=-1, keepdims=True)
    return (x - mu) * jax.lax.rsqrt(var + eps) * w + b


def _mha_ref(q_in, kv_in, in_w, in_b, out_w, out_b, num_heads):
    d = q_in.shape[-1]
    hd = d // num_heads
    scale = 1.0 / float(np.sqrt(hd))
    q = _linear(q_in, in_w[0:d], in_b[:, 0:d])
    k = _linear(kv_in, in_w[d:2 * d], in_b[:, d:2 * d])
    v = _linear(kv_in, in_w[2 * d:3 * d], in_b[:, 2 * d:3 * d])
    heads = []
    for h in range(num_heads):
        sl = slice(h * hd, (h + 1) * hd)
        qh, kh, vh = q[:, sl], k[:, sl], v[:, sl]
        s = jax.lax.dot_general(qh, kh, (((1,), (1,)), ((), ())),
                                preferred_element_type=jnp.float32) * scale
        s = s - jnp.max(s, axis=-1, keepdims=True)
        p = jnp.exp(s)
        p = p / jnp.sum(p, axis=-1, keepdims=True)
        heads.append(jnp.dot(p, vh, preferred_element_type=jnp.float32))
    o = jnp.concatenate(heads, axis=-1)
    return _linear(o, out_w, out_b)


def _decoder_layer_ref(tgt, mem, p, num_heads):
    (sa_in_w, sa_in_b, sa_out_w, sa_out_b,
     ca_in_w, ca_in_b, ca_out_w, ca_out_b,
     lin1_w, lin1_b, lin2_w, lin2_b,
     n1_w, n1_b, n2_w, n2_b, n3_w, n3_b) = p
    sa = _mha_ref(tgt, tgt, sa_in_w, sa_in_b, sa_out_w, sa_out_b, num_heads)
    x = _layer_norm_ref(tgt + sa, n1_w, n1_b)
    ca = _mha_ref(x, mem, ca_in_w, ca_in_b, ca_out_w, ca_out_b, num_heads)
    x = _layer_norm_ref(x + ca, n2_w, n2_b)
    h = jnp.maximum(_linear(x, lin1_w, lin1_b), 0.0)
    ff = _linear(h, lin2_w, lin2_b)
    return _layer_norm_ref(x + ff, n3_w, n3_b)


def detr_query_reference(x, query_embed, layer_params, num_heads, input_dim):
    B = x.shape[0]
    mem = x.reshape(B, -1, input_dim)
    outs = []
    for b in range(B):
        t = query_embed[0]
        for p in layer_params:
            t = _decoder_layer_ref(t, mem[b], p, num_heads)
        outs.append(t)
    return jnp.stack(outs)


# ---------------------------------------------------------------------------
# deterministic parameter init (synthetic, torch parameter conventions)
# ---------------------------------------------------------------------------
def init_params(key, input_dim, num_layers, num_query, ff_dim=FF_DIM):
    D = input_dim
    kq, key = jax.random.split(key)
    query_embed = jax.random.normal(kq, (1, num_query, D), jnp.float32)

    def w(k, shape, scale=0.02):
        return scale * jax.random.normal(k, shape, jnp.float32)

    layers = []
    for _ in range(num_layers):
        ks = jax.random.split(key, 7)
        key = ks[0]
        layers.append((
            w(ks[1], (3 * D, D)), jnp.zeros((1, 3 * D), jnp.float32),   # self-attn in_proj
            w(ks[2], (D, D)),     jnp.zeros((1, D), jnp.float32),       # self-attn out_proj
            w(ks[3], (3 * D, D)), jnp.zeros((1, 3 * D), jnp.float32),   # cross-attn in_proj
            w(ks[4], (D, D)),     jnp.zeros((1, D), jnp.float32),       # cross-attn out_proj
            w(ks[5], (ff_dim, D)), jnp.zeros((1, ff_dim), jnp.float32), # linear1
            w(ks[6], (D, ff_dim)), jnp.zeros((1, D), jnp.float32),      # linear2
            jnp.ones((1, D), jnp.float32), jnp.zeros((1, D), jnp.float32),  # norm1
            jnp.ones((1, D), jnp.float32), jnp.zeros((1, D), jnp.float32),  # norm2
            jnp.ones((1, D), jnp.float32), jnp.zeros((1, D), jnp.float32),  # norm3
        ))
    return query_embed, layers


if __name__ == "__main__":
    # small shapes: B=2, C=4, H=W=16 -> memory seq = 4*16*16/32 = 32 tokens
    B, C, Himg, Wimg = 2, 4, 16, 16
    input_dim, num_heads, num_layers, num_query = 32, 4, 2, 8

    key = jax.random.PRNGKey(0)
    kx, kp = jax.random.split(key)
    x = jax.random.normal(kx, (B, C, Himg, Wimg), jnp.float32)
    query_embed, layer_params = init_params(kp, input_dim, num_layers, num_query)

    fwd = jax.jit(functools.partial(detr_query_forward,
                                    num_heads=num_heads, input_dim=input_dim))
    out = jax.block_until_ready(fwd(x, query_embed, layer_params))

    ref = detr_query_reference(x, query_embed, layer_params, num_heads, input_dim)
    # bf16 matmul operands + approx reciprocal -> compare against the f32
    # reference with a correspondingly looser tolerance.
    np.testing.assert_allclose(np.asarray(out), np.asarray(ref), rtol=2e-2, atol=2e-2)
    assert out.shape == (B, num_query, input_dim)
    print("KERNEL_OK")
</pallas_src>

<mosaic_0001>
module attributes {stable_mosaic.version = 11 : i64} {
  func.func @_detr_layer_kernel(%arg0: i32, %arg1: i32, %arg2: memref<1x8x32xf32, #tpu.memory_space<vmem>>, %arg3: memref<1x32x32xf32, #tpu.memory_space<vmem>>, %arg4: memref<1x8x32x32xbf16, #tpu.memory_space<vmem>>, %arg5: memref<1x32x2048xbf16, #tpu.memory_space<vmem>>, %arg6: memref<1x2048x32xbf16, #tpu.memory_space<vmem>>, %arg7: memref<1x1x2048xf32, #tpu.memory_space<vmem>>, %arg8: memref<1x15x32xf32, #tpu.memory_space<vmem>>, %arg9: memref<1x8x32xf32, #tpu.memory_space<vmem>>) attributes {dimension_semantics = [#tpu.dimension_semantics<parallel>, #tpu.dimension_semantics<arbitrary>], iteration_bounds = array<i64: 2, 2>, scalar_prefetch = 0 : i64, scratch_operands = 0 : i64, tpu.core_type = #tpu.core_type<tc>, window_params = [{pipeline_mode = #tpu.pipeline_mode<synchronous>, transform_indices = @transform_0, window_bounds = array<i64: 1, 8, 32>}, {transform_indices = @transform_1, window_bounds = array<i64: 1, 32, 32>}, {transform_indices = @transform_2, window_bounds = array<i64: 1, 8, 32, 32>}, {transform_indices = @transform_3, window_bounds = array<i64: 1, 32, 2048>}, {transform_indices = @transform_4, window_bounds = array<i64: 1, 2048, 32>}, {transform_indices = @transform_5, window_bounds = array<i64: 1, 1, 2048>}, {transform_indices = @transform_6, window_bounds = array<i64: 1, 15, 32>}, {transform_indices = @transform_7, window_bounds = array<i64: 1, 8, 32>}]} {
    %c0_i32 = arith.constant 0 : i32
    %0 = arith.cmpi eq, %arg1, %c0_i32 : i32
    %1 = arith.extui %0 : i1 to i32
    %c0_i32_0 = arith.constant 0 : i32
    %2 = arith.cmpi ne, %1, %c0_i32_0 : i32
    scf.if %2 {
      %c0_106 = arith.constant 0 : index
      %c0_107 = arith.constant 0 : index
      %c0_108 = arith.constant 0 : index
      %302 = vector.load %arg2[%c0_106, %c0_107, %c0_108] : memref<1x8x32xf32, #tpu.memory_space<vmem>>, vector<1x8x32xf32>
      %303 = vector.shape_cast %302 : vector<1x8x32xf32> to vector<8x32xf32>
      %c0_109 = arith.constant 0 : index
      %c0_110 = arith.constant 0 : index
      %c0_111 = arith.constant 0 : index
      %304 = vector.load %arg9[%c0_109, %c0_110, %c0_111] : memref<1x8x32xf32, #tpu.memory_space<vmem>>, vector<1x8x32xf32>
      %305 = vector.shape_cast %304 : vector<1x8x32xf32> to vector<8x32xf32>
      %306 = vector.shape_cast %303 : vector<8x32xf32> to vector<1x8x32xf32>
      tpu.vector_store %arg9[%c0_109, %c0_110, %c0_111], %306 {strides = array<i32>} : memref<1x8x32xf32, #tpu.memory_space<vmem>>, vector<1x8x32xf32>,
    } else {
    }
    %c0 = arith.constant 0 : index
    %c0_1 = arith.constant 0 : index
    %c0_2 = arith.constant 0 : index
    %3 = vector.load %arg9[%c0, %c0_1, %c0_2] : memref<1x8x32xf32, #tpu.memory_space<vmem>>, vector<1x8x32xf32>
    %4 = vector.shape_cast %3 : vector<1x8x32xf32> to vector<8x32xf32>
    %c0_3 = arith.constant 0 : index
    %c0_4 = arith.constant 0 : index
    %c0_5 = arith.constant 0 : index
    %5 = vector.load %arg3[%c0_3, %c0_4, %c0_5] : memref<1x32x32xf32, #tpu.memory_space<vmem>>, vector<1x32x32xf32>
    %6 = vector.shape_cast %5 : vector<1x32x32xf32> to vector<32x32xf32>
    %c0_6 = arith.constant 0 : index
    %c0_7 = arith.constant 0 : index
    %c0_8 = arith.constant 0 : index
    %7 = vector.load %arg8[%c0_6, %c0_7, %c0_8] : memref<1x15x32xf32, #tpu.memory_space<vmem>>, vector<1x15x32xf32>
    %8 = vector.shape_cast %7 : vector<1x15x32xf32> to vector<15x32xf32>
    %c0_9 = arith.constant 0 : index
    %c0_10 = arith.constant 0 : index
    %c0_11 = arith.constant 0 : index
    %c0_12 = arith.constant 0 : index
    %9 = vector.load %arg4[%c0_9, %c0_10, %c0_11, %c0_12] : memref<1x8x32x32xbf16, #tpu.memory_space<vmem>>, vector<1x1x32x32xbf16>
    %10 = vector.shape_cast %9 : vector<1x1x32x32xbf16> to vector<32x32xbf16>
    %c0_13 = arith.constant 0 : index
    %c1 = arith.constant 1 : index
    %c0_14 = arith.constant 0 : index
    %c0_15 = arith.constant 0 : index
    %11 = vector.load %arg4[%c0_13, %c1, %c0_14, %c0_15] : memref<1x8x32x32xbf16, #tpu.memory_space<vmem>>, vector<1x1x32x32xbf16>
    %12 = vector.shape_cast %11 : vector<1x1x32x32xbf16> to vector<32x32xbf16>
    %c0_16 = arith.constant 0 : index
    %c2 = arith.constant 2 : index
    %c0_17 = arith.constant 0 : index
    %c0_18 = arith.constant 0 : index
    %13 = vector.load %arg4[%c0_16, %c2, %c0_17, %c0_18] : memref<1x8x32x32xbf16, #tpu.memory_space<vmem>>, vector<1x1x32x32xbf16>
    %14 = vector.shape_cast %13 : vector<1x1x32x32xbf16> to vector<32x32xbf16>
    %c0_19 = arith.constant 0 : index
    %c3 = arith.constant 3 : index
    %c0_20 = arith.constant 0 : index
    %c0_21 = arith.constant 0 : index
    %15 = vector.load %arg4[%c0_19, %c3, %c0_20, %c0_21] : memref<1x8x32x32xbf16, #tpu.memory_space<vmem>>, vector<1x1x32x32xbf16>
    %16 = vector.shape_cast %15 : vector<1x1x32x32xbf16> to vector<32x32xbf16>
    %17 = vector.extract_strided_slice %8 {offsets = [0, 0], sizes = [1, 32], strides = [1, 1]} : vector<15x32xf32> to vector<1x32xf32>
    %18 = vector.extract_strided_slice %8 {offsets = [1, 0], sizes = [1, 32], strides = [1, 1]} : vector<15x32xf32> to vector<1x32xf32>
    %19 = vector.extract_strided_slice %8 {offsets = [2, 0], sizes = [1, 32], strides = [1, 1]} : vector<15x32xf32> to vector<1x32xf32>
    %20 = vector.extract_strided_slice %8 {offsets = [3, 0], sizes = [1, 32], strides = [1, 1]} : vector<15x32xf32> to vector<1x32xf32>
    %21 = arith.truncf %4 : vector<8x32xf32> to vector<8x32xbf16>
    %cst = arith.constant dense<0.000000e+00> : vector<8x32xf32>
    %22 = tpu.matmul %21, %10, %cst {dimension_numbers = #tpu.dot_dimension_numbers<[1], [0], [0], [1], [0, 0, 1, 1], [], []>} : vector<8x32xbf16>, vector<32x32xbf16>, vector<8x32xf32> -> vector<8x32xf32>
    %23 = vector.broadcast %17 : vector<1x32xf32> to vector<8x32xf32>
    %24 = arith.addf %22, %23 : vector<8x32xf32>
    %25 = arith.truncf %4 : vector<8x32xf32> to vector<8x32xbf16>
    %cst_22 = arith.constant dense<0.000000e+00> : vector<8x32xf32>
    %26 = tpu.matmul %25, %12, %cst_22 {dimension_numbers = #tpu.dot_dimension_numbers<[1], [0], [0], [1], [0, 0, 1, 1], [], []>} : vector<8x32xbf16>, vector<32x32xbf16>, vector<8x32xf32> -> vector<8x32xf32>
    %27 = vector.broadcast %18 : vector<1x32xf32> to vector<8x32xf32>
    %28 = arith.addf %26, %27 : vector<8x32xf32>
    %29 = arith.truncf %4 : vector<8x32xf32> to vector<8x32xbf16>
    %cst_23 = arith.constant dense<0.000000e+00> : vector<8x32xf32>
    %30 = tpu.matmul %29, %14, %cst_23 {dimension_numbers = #tpu.dot_dimension_numbers<[1], [0], [0], [1], [0, 0, 1, 1], [], []>} : vector<8x32xbf16>, vector<32x32xbf16>, vector<8x32xf32> -> vector<8x32xf32>
    %31 = vector.broadcast %19 : vector<1x32xf32> to vector<8x32xf32>
    %32 = arith.addf %30, %31 : vector<8x32xf32>
    %33 = arith.truncf %24 : vector<8x32xf32> to vector<8x32xbf16>
    %34 = arith.truncf %28 : vector<8x32xf32> to vector<8x32xbf16>
    %35 = arith.truncf %32 : vector<8x32xf32> to vector<8x32xbf16>
    %36 = vector.extract_strided_slice %33 {offsets = [0, 0], sizes = [8, 8], strides = [1, 1]} : vector<8x32xbf16> to vector<8x8xbf16>
    %37 = vector.extract_strided_slice %34 {offsets = [0, 0], sizes = [8, 8], strides = [1, 1]} : vector<8x32xbf16> to vector<8x8xbf16>
    %cst_24 = arith.constant dense<0.000000e+00> : vector<8x8xf32>
    %38 = tpu.matmul %36, %37, %cst_24 {dimension_numbers = #tpu.dot_dimension_numbers<[1], [1], [0], [0], [0, 0, 1, 0], [], []>} : vector<8x8xbf16>, vector<8x8xbf16>, vector<8x8xf32> -> vector<8x8xf32>
    %cst_25 = arith.constant dense<0xFF800000> : vector<8xf32>
    %39 = vector.multi_reduction <maximumf>, %38, %cst_25 [1] : vector<8x8xf32> to vector<8xf32>
    %40 = vector.shape_cast %39 : vector<8xf32> to vector<8x1xf32>
    %41 = vector.broadcast %40 : vector<8x1xf32> to vector<8x8xf32>
    %42 = arith.subf %38, %41 : vector<8x8xf32>
    %43 = math.exp %42 : vector<8x8xf32>
    %cst_26 = arith.constant dense<0.000000e+00> : vector<8xf32>
    %44 = vector.multi_reduction <add>, %43, %cst_26 [1] : vector<8x8xf32> to vector<8xf32>
    %45 = vector.shape_cast %44 : vector<8xf32> to vector<8x1xf32>
    %46 = tpu.reciprocal %45 {approx = true} : vector<8x1xf32> -> vector<8x1xf32>
    %47 = vector.broadcast %46 : vector<8x1xf32> to vector<8x8xf32>
    %48 = arith.mulf %43, %47 : vector<8x8xf32>
    %49 = arith.truncf %48 : vector<8x8xf32> to vector<8x8xbf16>
    %50 = vector.extract_strided_slice %35 {offsets = [0, 0], sizes = [8, 8], strides = [1, 1]} : vector<8x32xbf16> to vector<8x8xbf16>
    %cst_27 = arith.constant dense<0.000000e+00> : vector<8x8xf32>
    %51 = tpu.matmul %49, %50, %cst_27 {dimension_numbers = #tpu.dot_dimension_numbers<[1], [0], [0], [1], [0, 0, 1, 1], [], []>} : vector<8x8xbf16>, vector<8x8xbf16>, vector<8x8xf32> -> vector<8x8xf32>
    %52 = vector.extract_strided_slice %33 {offsets = [0, 8], sizes = [8, 8], strides = [1, 1]} : vector<8x32xbf16> to vector<8x8xbf16>
    %53 = vector.extract_strided_slice %34 {offsets = [0, 8], sizes = [8, 8], strides = [1, 1]} : vector<8x32xbf16> to vector<8x8xbf16>
    %cst_28 = arith.constant dense<0.000000e+00> : vector<8x8xf32>
    %54 = tpu.matmul %52, %53, %cst_28 {dimension_numbers = #tpu.dot_dimension_numbers<[1], [1], [0], [0], [0, 0, 1, 0], [], []>} : vector<8x8xbf16>, vector<8x8xbf16>, vector<8x8xf32> -> vector<8x8xf32>
    %cst_29 = arith.constant dense<0xFF800000> : vector<8xf32>
    %55 = vector.multi_reduction <maximumf>, %54, %cst_29 [1] : vector<8x8xf32> to vector<8xf32>
    %56 = vector.shape_cast %55 : vector<8xf32> to vector<8x1xf32>
    %57 = vector.broadcast %56 : vector<8x1xf32> to vector<8x8xf32>
    %58 = arith.subf %54, %57 : vector<8x8xf32>
    %59 = math.exp %58 : vector<8x8xf32>
    %cst_30 = arith.constant dense<0.000000e+00> : vector<8xf32>
    %60 = vector.multi_reduction <add>, %59, %cst_30 [1] : vector<8x8xf32> to vector<8xf32>
    %61 = vector.shape_cast %60 : vector<8xf32> to vector<8x1xf32>
    %62 = tpu.reciprocal %61 {approx = true} : vector<8x1xf32> -> vector<8x1xf32>
    %63 = vector.broadcast %62 : vector<8x1xf32> to vector<8x8xf32>
    %64 = arith.mulf %59, %63 : vector<8x8xf32>
    %65 = arith.truncf %64 : vector<8x8xf32> to vector<8x8xbf16>
    %66 = vector.extract_strided_slice %35 {offsets = [0, 8], sizes = [8, 8], strides = [1, 1]} : vector<8x32xbf16> to vector<8x8xbf16>
    %cst_31 = arith.constant dense<0.000000e+00> : vector<8x8xf32>
    %67 = tpu.matmul %65, %66, %cst_31 {dimension_numbers = #tpu.dot_dimension_numbers<[1], [0], [0], [1], [0, 0, 1, 1], [], []>} : vector<8x8xbf16>, vector<8x8xbf16>, vector<8x8xf32> -> vector<8x8xf32>
    %68 = vector.extract_strided_slice %33 {offsets = [0, 16], sizes = [8, 8], strides = [1, 1]} : vector<8x32xbf16> to vector<8x8xbf16>
    %69 = vector.extract_strided_slice %34 {offsets = [0, 16], sizes = [8, 8], strides = [1, 1]} : vector<8x32xbf16> to vector<8x8xbf16>
    %cst_32 = arith.constant dense<0.000000e+00> : vector<8x8xf32>
    %70 = tpu.matmul %68, %69, %cst_32 {dimension_numbers = #tpu.dot_dimension_numbers<[1], [1], [0], [0], [0, 0, 1, 0], [], []>} : vector<8x8xbf16>, vector<8x8xbf16>, vector<8x8xf32> -> vector<8x8xf32>
    %cst_33 = arith.constant dense<0xFF800000> : vector<8xf32>
    %71 = vector.multi_reduction <maximumf>, %70, %cst_33 [1] : vector<8x8xf32> to vector<8xf32>
    %72 = vector.shape_cast %71 : vector<8xf32> to vector<8x1xf32>
    %73 = vector.broadcast %72 : vector<8x1xf32> to vector<8x8xf32>
    %74 = arith.subf %70, %73 : vector<8x8xf32>
    %75 = math.exp %74 : vector<8x8xf32>
    %cst_34 = arith.constant dense<0.000000e+00> : vector<8xf32>
    %76 = vector.multi_reduction <add>, %75, %cst_34 [1] : vector<8x8xf32> to vector<8xf32>
    %77 = vector.shape_cast %76 : vector<8xf32> to vector<8x1xf32>
    %78 = tpu.reciprocal %77 {approx = true} : vector<8x1xf32> -> vector<8x1xf32>
    %79 = vector.broadcast %78 : vector<8x1xf32> to vector<8x8xf32>
    %80 = arith.mulf %75, %79 : vector<8x8xf32>
    %81 = arith.truncf %80 : vector<8x8xf32> to vector<8x8xbf16>
    %82 = vector.extract_strided_slice %35 {offsets = [0, 16], sizes = [8, 8], strides = [1, 1]} : vector<8x32xbf16> to vector<8x8xbf16>
    %cst_35 = arith.constant dense<0.000000e+00> : vector<8x8xf32>
    %83 = tpu.matmul %81, %82, %cst_35 {dimension_numbers = #tpu.dot_dimension_numbers<[1], [0], [0], [1], [0, 0, 1, 1], [], []>} : vector<8x8xbf16>, vector<8x8xbf16>, vector<8x8xf32> -> vector<8x8xf32>
    %84 = vector.extract_strided_slice %33 {offsets = [0, 24], sizes = [8, 8], strides = [1, 1]} : vector<8x32xbf16> to vector<8x8xbf16>
    %85 = vector.extract_strided_slice %34 {offsets = [0, 24], sizes = [8, 8], strides = [1, 1]} : vector<8x32xbf16> to vector<8x8xbf16>
    %cst_36 = arith.constant dense<0.000000e+00> : vector<8x8xf32>
    %86 = tpu.matmul %84, %85, %cst_36 {dimension_numbers = #tpu.dot_dimension_numbers<[1], [1], [0], [0], [0, 0, 1, 0], [], []>} : vector<8x8xbf16>, vector<8x8xbf16>, vector<8x8xf32> -> vector<8x8xf32>
    %cst_37 = arith.constant dense<0xFF800000> : vector<8xf32>
    %87 = vector.multi_reduction <maximumf>, %86, %cst_37 [1] : vector<8x8xf32> to vector<8xf32>
    %88 = vector.shape_cast %87 : vector<8xf32> to vector<8x1xf32>
    %89 = vector.broadcast %88 : vector<8x1xf32> to vector<8x8xf32>
    %90 = arith.subf %86, %89 : vector<8x8xf32>
    %91 = math.exp %90 : vector<8x8xf32>
    %cst_38 = arith.constant dense<0.000000e+00> : vector<8xf32>
    %92 = vector.multi_reduction <add>, %91, %cst_38 [1] : vector<8x8xf32> to vector<8xf32>
    %93 = vector.shape_cast %92 : vector<8xf32> to vector<8x1xf32>
    %94 = tpu.reciprocal %93 {approx = true} : vector<8x1xf32> -> vector<8x1xf32>
    %95 = vector.broadcast %94 : vector<8x1xf32> to vector<8x8xf32>
    %96 = arith.mulf %91, %95 : vector<8x8xf32>
    %97 = arith.truncf %96 : vector<8x8xf32> to vector<8x8xbf16>
    %98 = vector.extract_strided_slice %35 {offsets = [0, 24], sizes = [8, 8], strides = [1, 1]} : vector<8x32xbf16> to vector<8x8xbf16>
    %cst_39 = arith.constant dense<0.000000e+00> : vector<8x8xf32>
    %99 = tpu.matmul %97, %98, %cst_39 {dimension_numbers = #tpu.dot_dimension_numbers<[1], [0], [0], [1], [0, 0, 1, 1], [], []>} : vector<8x8xbf16>, vector<8x8xbf16>, vector<8x8xf32> -> vector<8x8xf32>
    %100 = tpu.concatenate %51, %67, %83, %99 in 1 : vector<8x8xf32>, vector<8x8xf32>, vector<8x8xf32>, vector<8x8xf32> -> vector<8x32xf32>
    %101 = arith.truncf %100 : vector<8x32xf32> to vector<8x32xbf16>
    %cst_40 = arith.constant dense<0.000000e+00> : vector<8x32xf32>
    %102 = tpu.matmul %101, %16, %cst_40 {dimension_numbers = #tpu.dot_dimension_numbers<[1], [0], [0], [1], [0, 0, 1, 1], [], []>} : vector<8x32xbf16>, vector<32x32xbf16>, vector<8x32xf32> -> vector<8x32xf32>
    %103 = vector.broadcast %20 : vector<1x32xf32> to vector<8x32xf32>
    %104 = arith.addf %102, %103 : vector<8x32xf32>
    %105 = arith.addf %4, %104 : vector<8x32xf32>
    %106 = vector.extract_strided_slice %8 {offsets = [9, 0], sizes = [1, 32], strides = [1, 1]} : vector<15x32xf32> to vector<1x32xf32>
    %107 = vector.extract_strided_slice %8 {offsets = [10, 0], sizes = [1, 32], strides = [1, 1]} : vector<15x32xf32> to vector<1x32xf32>
    %cst_41 = arith.constant dense<0.000000e+00> : vector<8xf32>
    %108 = vector.multi_reduction <add>, %105, %cst_41 [1] : vector<8x32xf32> to vector<8xf32>
    %109 = vector.shape_cast %108 : vector<8xf32> to vector<8x1xf32>
    %cst_42 = arith.constant 3.200000e+01 : f32
    %110 = vector.broadcast %cst_42 : f32 to vector<8x1xf32>
    %111 = arith.divf %109, %110 : vector<8x1xf32>
    %112 = arith.mulf %105, %105 : vector<8x32xf32>
    %cst_43 = arith.constant dense<0.000000e+00> : vector<8xf32>
    %113 = vector.multi_reduction <add>, %112, %cst_43 [1] : vector<8x32xf32> to vector<8xf32>
    %114 = vector.shape_cast %113 : vector<8xf32> to vector<8x1xf32>
    %cst_44 = arith.constant 3.200000e+01 : f32
    %115 = vector.broadcast %cst_44 : f32 to vector<8x1xf32>
    %116 = arith.divf %114, %115 : vector<8x1xf32>
    %117 = arith.mulf %111, %111 : vector<8x1xf32>
    %118 = arith.subf %116, %117 : vector<8x1xf32>
    %cst_45 = arith.constant 0.000000e+00 : f32
    %119 = vector.broadcast %cst_45 : f32 to vector<8x1xf32>
    %120 = arith.maximumf %118, %119 : vector<8x1xf32>
    %121 = vector.broadcast %111 : vector<8x1xf32> to vector<8x32xf32>
    %122 = arith.subf %105, %121 : vector<8x32xf32>
    %cst_46 = arith.constant 9.99999974E-6 : f32
    %123 = vector.broadcast %cst_46 : f32 to vector<8x1xf32>
    %124 = arith.addf %120, %123 : vector<8x1xf32>
    %125 = math.rsqrt %124 : vector<8x1xf32>
    %126 = vector.broadcast %125 : vector<8x1xf32> to vector<8x32xf32>
    %127 = arith.mulf %122, %126 : vector<8x32xf32>
    %128 = vector.broadcast %106 : vector<1x32xf32> to vector<8x32xf32>
    %129 = arith.mulf %127, %128 : vector<8x32xf32>
    %130 = vector.broadcast %107 : vector<1x32xf32> to vector<8x32xf32>
    %131 = arith.addf %129, %130 : vector<8x32xf32>
    %c0_47 = arith.constant 0 : index
    %c4 = arith.constant 4 : index
    %c0_48 = arith.constant 0 : index
    %c0_49 = arith.constant 0 : index
    %132 = vector.load %arg4[%c0_47, %c4, %c0_48, %c0_49] : memref<1x8x32x32xbf16, #tpu.memory_space<vmem>>, vector<1x1x32x32xbf16>
    %133 = vector.shape_cast %132 : vector<1x1x32x32xbf16> to vector<32x32xbf16>
    %c0_50 = arith.constant 0 : index
    %c5 = arith.constant 5 : index
    %c0_51 = arith.constant 0 : index
    %c0_52 = arith.constant 0 : index
    %134 = vector.load %arg4[%c0_50, %c5, %c0_51, %c0_52] : memref<1x8x32x32xbf16, #tpu.memory_space<vmem>>, vector<1x1x32x32xbf16>
    %135 = vector.shape_cast %134 : vector<1x1x32x32xbf16> to vector<32x32xbf16>
    %c0_53 = arith.constant 0 : index
    %c6 = arith.constant 6 : index
    %c0_54 = arith.constant 0 : index
    %c0_55 = arith.constant 0 : index
    %136 = vector.load %arg4[%c0_53, %c6, %c0_54, %c0_55] : memref<1x8x32x32xbf16, #tpu.memory_space<vmem>>, vector<1x1x32x32xbf16>
    %137 = vector.shape_cast %136 : vector<1x1x32x32xbf16> to vector<32x32xbf16>
    %c0_56 = arith.constant 0 : index
    %c7 = arith.constant 7 : index
    %c0_57 = arith.constant 0 : index
    %c0_58 = arith.constant 0 : index
    %138 = vector.load %arg4[%c0_56, %c7, %c0_57, %c0_58] : memref<1x8x32x32xbf16, #tpu.memory_space<vmem>>, vector<1x1x32x32xbf16>
    %139 = vector.shape_cast %138 : vector<1x1x32x32xbf16> to vector<32x32xbf16>
    %140 = vector.extract_strided_slice %8 {offsets = [4, 0], sizes = [1, 32], strides = [1, 1]} : vector<15x32xf32> to vector<1x32xf32>
    %141 = vector.extract_strided_slice %8 {offsets = [5, 0], sizes = [1, 32], strides = [1, 1]} : vector<15x32xf32> to vector<1x32xf32>
    %142 = vector.extract_strided_slice %8 {offsets = [6, 0], sizes = [1, 32], strides = [1, 1]} : vector<15x32xf32> to vector<1x32xf32>
    %143 = vector.extract_strided_slice %8 {offsets = [7, 0], sizes = [1, 32], strides = [1, 1]} : vector<15x32xf32> to vector<1x32xf32>
    %144 = arith.truncf %131 : vector<8x32xf32> to vector<8x32xbf16>
    %cst_59 = arith.constant dense<0.000000e+00> : vector<8x32xf32>
    %145 = tpu.matmul %144, %133, %cst_59 {dimension_numbers = #tpu.dot_dimension_numbers<[1], [0], [0], [1], [0, 0, 1, 1], [], []>} : vector<8x32xbf16>, vector<32x32xbf16>, vector<8x32xf32> -> vector<8x32xf32>
    %146 = vector.broadcast %140 : vector<1x32xf32> to vector<8x32xf32>
    %147 = arith.addf %145, %146 : vector<8x32xf32>
    %148 = arith.truncf %6 : vector<32x32xf32> to vector<32x32xbf16>
    %cst_60 = arith.constant dense<0.000000e+00> : vector<32x32xf32>
    %149 = tpu.matmul %148, %135, %cst_60 {dimension_numbers = #tpu.dot_dimension_numbers<[1], [0], [0], [1], [0, 0, 1, 1], [], []>} : vector<32x32xbf16>, vector<32x32xbf16>, vector<32x32xf32> -> vector<32x32xf32>
    %150 = vector.broadcast %141 : vector<1x32xf32> to vector<32x32xf32>
    %151 = arith.addf %149, %150 : vector<32x32xf32>
    %152 = arith.truncf %6 : vector<32x32xf32> to vector<32x32xbf16>
    %cst_61 = arith.constant dense<0.000000e+00> : vector<32x32xf32>
    %153 = tpu.matmul %152, %137, %cst_61 {dimension_numbers = #tpu.dot_dimension_numbers<[1], [0], [0], [1], [0, 0, 1, 1], [], []>} : vector<32x32xbf16>, vector<32x32xbf16>, vector<32x32xf32> -> vector<32x32xf32>
    %154 = vector.broadcast %142 : vector<1x32xf32> to vector<32x32xf32>
    %155 = arith.addf %153, %154 : vector<32x32xf32>
    %156 = arith.truncf %147 : vector<8x32xf32> to vector<8x32xbf16>
    %157 = arith.truncf %151 : vector<32x32xf32> to vector<32x32xbf16>
    %158 = arith.truncf %155 : vector<32x32xf32> to vector<32x32xbf16>
    %159 = vector.extract_strided_slice %156 {offsets = [0, 0], sizes = [8, 8], strides = [1, 1]} : vector<8x32xbf16> to vector<8x8xbf16>
    %160 = vector.extract_strided_slice %157 {offsets = [0, 0], sizes = [32, 8], strides = [1, 1]} : vector<32x32xbf16> to vector<32x8xbf16>
    %cst_62 = arith.constant dense<0.000000e+00> : vector<8x32xf32>
    %161 = tpu.matmul %159, %160, %cst_62 {dimension_numbers = #tpu.dot_dimension_numbers<[1], [1], [0], [0], [0, 0, 1, 0], [], []>} : vector<8x8xbf16>, vector<32x8xbf16>, vector<8x32xf32> -> vector<8x32xf32>
    %cst_63 = arith.constant dense<0xFF800000> : vector<8xf32>
    %162 = vector.multi_reduction <maximumf>, %161, %cst_63 [1] : vector<8x32xf32> to vector<8xf32>
    %163 = vector.shape_cast %162 : vector<8xf32> to vector<8x1xf32>
    %164 = vector.broadcast %163 : vector<8x1xf32> to vector<8x32xf32>
    %165 = arith.subf %161, %164 : vector<8x32xf32>
    %166 = math.exp %165 : vector<8x32xf32>
    %cst_64 = arith.constant dense<0.000000e+00> : vector<8xf32>
    %167 = vector.multi_reduction <add>, %166, %cst_64 [1] : vector<8x32xf32> to vector<8xf32>
    %168 = vector.shape_cast %167 : vector<8xf32> to vector<8x1xf32>
    %169 = tpu.reciprocal %168 {approx = true} : vector<8x1xf32> -> vector<8x1xf32>
    %170 = vector.broadcast %169 : vector<8x1xf32> to vector<8x32xf32>
    %171 = arith.mulf %166, %170 : vector<8x32xf32>
    %172 = arith.truncf %171 : vector<8x32xf32> to vector<8x32xbf16>
    %173 = vector.extract_strided_slice %158 {offsets = [0, 0], sizes = [32, 8], strides = [1, 1]} : vector<32x32xbf16> to vector<32x8xbf16>
    %cst_65 = arith.constant dense<0.000000e+00> : vector<8x8xf32>
    %174 = tpu.matmul %172, %173, %cst_65 {dimension_numbers = #tpu.dot_dimension_numbers<[1], [0], [0], [1], [0, 0, 1, 1], [], []>} : vector<8x32xbf16>, vector<32x8xbf16>, vector<8x8xf32> -> vector<8x8xf32>
    %175 = vector.extract_strided_slice %156 {offsets = [0, 8], sizes = [8, 8], strides = [1, 1]} : vector<8x32xbf16> to vector<8x8xbf16>
    %176 = vector.extract_strided_slice %157 {offsets = [0, 8], sizes = [32, 8], strides = [1, 1]} : vector<32x32xbf16> to vector<32x8xbf16>
    %cst_66 = arith.constant dense<0.000000e+00> : vector<8x32xf32>
    %177 = tpu.matmul %175, %176, %cst_66 {dimension_numbers = #tpu.dot_dimension_numbers<[1], [1], [0], [0], [0, 0, 1, 0], [], []>} : vector<8x8xbf16>, vector<32x8xbf16>, vector<8x32xf32> -> vector<8x32xf32>
    %cst_67 = arith.constant dense<0xFF800000> : vector<8xf32>
    %178 = vector.multi_reduction <maximumf>, %177, %cst_67 [1] : vector<8x32xf32> to vector<8xf32>
    %179 = vector.shape_cast %178 : vector<8xf32> to vector<8x1xf32>
    %180 = vector.broadcast %179 : vector<8x1xf32> to vector<8x32xf32>
    %181 = arith.subf %177, %180 : vector<8x32xf32>
    %182 = math.exp %181 : vector<8x32xf32>
    %cst_68 = arith.constant dense<0.000000e+00> : vector<8xf32>
    %183 = vector.multi_reduction <add>, %182, %cst_68 [1] : vector<8x32xf32> to vector<8xf32>
    %184 = vector.shape_cast %183 : vector<8xf32> to vector<8x1xf32>
    %185 = tpu.reciprocal %184 {approx = true} : vector<8x1xf32> -> vector<8x1xf32>
    %186 = vector.broadcast %185 : vector<8x1xf32> to vector<8x32xf32>
    %187 = arith.mulf %182, %186 : vector<8x32xf32>
    %188 = arith.truncf %187 : vector<8x32xf32> to vector<8x32xbf16>
    %189 = vector.extract_strided_slice %158 {offsets = [0, 8], sizes = [32, 8], strides = [1, 1]} : vector<32x32xbf16> to vector<32x8xbf16>
    %cst_69 = arith.constant dense<0.000000e+00> : vector<8x8xf32>
    %190 = tpu.matmul %188, %189, %cst_69 {dimension_numbers = #tpu.dot_dimension_numbers<[1], [0], [0], [1], [0, 0, 1, 1], [], []>} : vector<8x32xbf16>, vector<32x8xbf16>, vector<8x8xf32> -> vector<8x8xf32>
    %191 = vector.extract_strided_slice %156 {offsets = [0, 16], sizes = [8, 8], strides = [1, 1]} : vector<8x32xbf16> to vector<8x8xbf16>
    %192 = vector.extract_strided_slice %157 {offsets = [0, 16], sizes = [32, 8], strides = [1, 1]} : vector<32x32xbf16> to vector<32x8xbf16>
    %cst_70 = arith.constant dense<0.000000e+00> : vector<8x32xf32>
    %193 = tpu.matmul %191, %192, %cst_70 {dimension_numbers = #tpu.dot_dimension_numbers<[1], [1], [0], [0], [0, 0, 1, 0], [], []>} : vector<8x8xbf16>, vector<32x8xbf16>, vector<8x32xf32> -> vector<8x32xf32>
    %cst_71 = arith.constant dense<0xFF800000> : vector<8xf32>
    %194 = vector.multi_reduction <maximumf>, %193, %cst_71 [1] : vector<8x32xf32> to vector<8xf32>
    %195 = vector.shape_cast %194 : vector<8xf32> to vector<8x1xf32>
    %196 = vector.broadcast %195 : vector<8x1xf32> to vector<8x32xf32>
    %197 = arith.subf %193, %196 : vector<8x32xf32>
    %198 = math.exp %197 : vector<8x32xf32>
    %cst_72 = arith.constant dense<0.000000e+00> : vector<8xf32>
    %199 = vector.multi_reduction <add>, %198, %cst_72 [1] : vector<8x32xf32> to vector<8xf32>
    %200 = vector.shape_cast %199 : vector<8xf32> to vector<8x1xf32>
    %201 = tpu.reciprocal %200 {approx = true} : vector<8x1xf32> -> vector<8x1xf32>
    %202 = vector.broadcast %201 : vector<8x1xf32> to vector<8x32xf32>
    %203 = arith.mulf %198, %202 : vector<8x32xf32>
    %204 = arith.truncf %203 : vector<8x32xf32> to vector<8x32xbf16>
    %205 = vector.extract_strided_slice %158 {offsets = [0, 16], sizes = [32, 8], strides = [1, 1]} : vector<32x32xbf16> to vector<32x8xbf16>
    %cst_73 = arith.constant dense<0.000000e+00> : vector<8x8xf32>
    %206 = tpu.matmul %204, %205, %cst_73 {dimension_numbers = #tpu.dot_dimension_numbers<[1], [0], [0], [1], [0, 0, 1, 1], [], []>} : vector<8x32xbf16>, vector<32x8xbf16>, vector<8x8xf32> -> vector<8x8xf32>
    %207 = vector.extract_strided_slice %156 {offsets = [0, 24], sizes = [8, 8], strides = [1, 1]} : vector<8x32xbf16> to vector<8x8xbf16>
    %208 = vector.extract_strided_slice %157 {offsets = [0, 24], sizes = [32, 8], strides = [1, 1]} : vector<32x32xbf16> to vector<32x8xbf16>
    %cst_74 = arith.constant dense<0.000000e+00> : vector<8x32xf32>
    %209 = tpu.matmul %207, %208, %cst_74 {dimension_numbers = #tpu.dot_dimension_numbers<[1], [1], [0], [0], [0, 0, 1, 0], [], []>} : vector<8x8xbf16>, vector<32x8xbf16>, vector<8x32xf32> -> vector<8x32xf32>
    %cst_75 = arith.constant dense<0xFF800000> : vector<8xf32>
    %210 = vector.multi_reduction <maximumf>, %209, %cst_75 [1] : vector<8x32xf32> to vector<8xf32>
    %211 = vector.shape_cast %210 : vector<8xf32> to vector<8x1xf32>
    %212 = vector.broadcast %211 : vector<8x1xf32> to vector<8x32xf32>
    %213 = arith.subf %209, %212 : vector<8x32xf32>
    %214 = math.exp %213 : vector<8x32xf32>
    %cst_76 = arith.constant dense<0.000000e+00> : vector<8xf32>
    %215 = vector.multi_reduction <add>, %214, %cst_76 [1] : vector<8x32xf32> to vector<8xf32>
    %216 = vector.shape_cast %215 : vector<8xf32> to vector<8x1xf32>
    %217 = tpu.reciprocal %216 {approx = true} : vector<8x1xf32> -> vector<8x1xf32>
    %218 = vector.broadcast %217 : vector<8x1xf32> to vector<8x32xf32>
    %219 = arith.mulf %214, %218 : vector<8x32xf32>
    %220 = arith.truncf %219 : vector<8x32xf32> to vector<8x32xbf16>
    %221 = vector.extract_strided_slice %158 {offsets = [0, 24], sizes = [32, 8], strides = [1, 1]} : vector<32x32xbf16> to vector<32x8xbf16>
    %cst_77 = arith.constant dense<0.000000e+00> : vector<8x8xf32>
    %222 = tpu.matmul %220, %221, %cst_77 {dimension_numbers = #tpu.dot_dimension_numbers<[1], [0], [0], [1], [0, 0, 1, 1], [], []>} : vector<8x32xbf16>, vector<32x8xbf16>, vector<8x8xf32> -> vector<8x8xf32>
    %223 = tpu.concatenate %174, %190, %206, %222 in 1 : vector<8x8xf32>, vector<8x8xf32>, vector<8x8xf32>, vector<8x8xf32> -> vector<8x32xf32>
    %224 = arith.truncf %223 : vector<8x32xf32> to vector<8x32xbf16>
    %cst_78 = arith.constant dense<0.000000e+00> : vector<8x32xf32>
    %225 = tpu.matmul %224, %139, %cst_78 {dimension_numbers = #tpu.dot_dimension_numbers<[1], [0], [0], [1], [0, 0, 1, 1], [], []>} : vector<8x32xbf16>, vector<32x32xbf16>, vector<8x32xf32> -> vector<8x32xf32>
    %226 = vector.broadcast %143 : vector<1x32xf32> to vector<8x32xf32>
    %227 = arith.addf %225, %226 : vector<8x32xf32>
    %228 = arith.addf %131, %227 : vector<8x32xf32>
    %229 = vector.extract_strided_slice %8 {offsets = [11, 0], sizes = [1, 32], strides = [1, 1]} : vector<15x32xf32> to vector<1x32xf32>
    %230 = vector.extract_strided_slice %8 {offsets = [12, 0], sizes = [1, 32], strides = [1, 1]} : vector<15x32xf32> to vector<1x32xf32>
    %cst_79 = arith.constant dense<0.000000e+00> : vector<8xf32>
    %231 = vector.multi_reduction <add>, %228, %cst_79 [1] : vector<8x32xf32> to vector<8xf32>
    %232 = vector.shape_cast %231 : vector<8xf32> to vector<8x1xf32>
    %cst_80 = arith.constant 3.200000e+01 : f32
    %233 = vector.broadcast %cst_80 : f32 to vector<8x1xf32>
    %234 = arith.divf %232, %233 : vector<8x1xf32>
    %235 = arith.mulf %228, %228 : vector<8x32xf32>
    %cst_81 = arith.constant dense<0.000000e+00> : vector<8xf32>
    %236 = vector.multi_reduction <add>, %235, %cst_81 [1] : vector<8x32xf32> to vector<8xf32>
    %237 = vector.shape_cast %236 : vector<8xf32> to vector<8x1xf32>
    %cst_82 = arith.constant 3.200000e+01 : f32
    %238 = vector.broadcast %cst_82 : f32 to vector<8x1xf32>
    %239 = arith.divf %237, %238 : vector<8x1xf32>
    %240 = arith.mulf %234, %234 : vector<8x1xf32>
    %241 = arith.subf %239, %240 : vector<8x1xf32>
    %cst_83 = arith.constant 0.000000e+00 : f32
    %242 = vector.broadcast %cst_83 : f32 to vector<8x1xf32>
    %243 = arith.maximumf %241, %242 : vector<8x1xf32>
    %244 = vector.broadcast %234 : vector<8x1xf32> to vector<8x32xf32>
    %245 = arith.subf %228, %244 : vector<8x32xf32>
    %cst_84 = arith.constant 9.99999974E-6 : f32
    %246 = vector.broadcast %cst_84 : f32 to vector<8x1xf32>
    %247 = arith.addf %243, %246 : vector<8x1xf32>
    %248 = math.rsqrt %247 : vector<8x1xf32>
    %249 = vector.broadcast %248 : vector<8x1xf32> to vector<8x32xf32>
    %250 = arith.mulf %245, %249 : vector<8x32xf32>
    %251 = vector.broadcast %229 : vector<1x32xf32> to vector<8x32xf32>
    %252 = arith.mulf %250, %251 : vector<8x32xf32>
    %253 = vector.broadcast %230 : vector<1x32xf32> to vector<8x32xf32>
    %254 = arith.addf %252, %253 : vector<8x32xf32>
    %c0_85 = arith.constant 0 : index
    %c0_86 = arith.constant 0 : index
    %c0_87 = arith.constant 0 : index
    %255 = vector.load %arg5[%c0_85, %c0_86, %c0_87] : memref<1x32x2048xbf16, #tpu.memory_space<vmem>>, vector<1x32x2048xbf16>
    %256 = vector.shape_cast %255 : vector<1x32x2048xbf16> to vector<32x2048xbf16>
    %257 = arith.truncf %254 : vector<8x32xf32> to vector<8x32xbf16>
    %cst_88 = arith.constant dense<0.000000e+00> : vector<8x2048xf32>
    %258 = tpu.matmul %257, %256, %cst_88 {dimension_numbers = #tpu.dot_dimension_numbers<[1], [0], [0], [1], [0, 0, 1, 1], [], []>} : vector<8x32xbf16>, vector<32x2048xbf16>, vector<8x2048xf32> -> vector<8x2048xf32>
    %c0_89 = arith.constant 0 : index
    %c0_90 = arith.constant 0 : index
    %c0_91 = arith.constant 0 : index
    %259 = vector.load %arg7[%c0_89, %c0_90, %c0_91] : memref<1x1x2048xf32, #tpu.memory_space<vmem>>, vector<1x1x2048xf32>
    %260 = vector.shape_cast %259 : vector<1x1x2048xf32> to vector<1x2048xf32>
    %261 = vector.broadcast %260 : vector<1x2048xf32> to vector<8x2048xf32>
    %262 = arith.addf %258, %261 : vector<8x2048xf32>
    %cst_92 = arith.constant 0.000000e+00 : f32
    %263 = vector.broadcast %cst_92 : f32 to vector<8x2048xf32>
    %264 = arith.maximumf %262, %263 : vector<8x2048xf32>
    %c0_93 = arith.constant 0 : index
    %c0_94 = arith.constant 0 : index
    %c0_95 = arith.constant 0 : index
    %265 = vector.load %arg6[%c0_93, %c0_94, %c0_95] : memref<1x2048x32xbf16, #tpu.memory_space<vmem>>, vector<1x2048x32xbf16>
    %266 = vector.shape_cast %265 : vector<1x2048x32xbf16> to vector<2048x32xbf16>
    %267 = arith.truncf %264 : vector<8x2048xf32> to vector<8x2048xbf16>
    %cst_96 = arith.constant dense<0.000000e+00> : vector<8x32xf32>
    %268 = tpu.matmul %267, %266, %cst_96 {dimension_numbers = #tpu.dot_dimension_numbers<[1], [0], [0], [1], [0, 0, 1, 1], [], []>} : vector<8x2048xbf16>, vector<2048x32xbf16>, vector<8x32xf32> -> vector<8x32xf32>
    %269 = vector.extract_strided_slice %8 {offsets = [8, 0], sizes = [1, 32], strides = [1, 1]} : vector<15x32xf32> to vector<1x32xf32>
    %270 = vector.broadcast %269 : vector<1x32xf32> to vector<8x32xf32>
    %271 = arith.addf %268, %270 : vector<8x32xf32>
    %272 = arith.addf %254, %271 : vector<8x32xf32>
    %273 = vector.extract_strided_slice %8 {offsets = [13, 0], sizes = [1, 32], strides = [1, 1]} : vector<15x32xf32> to vector<1x32xf32>
    %274 = vector.extract_strided_slice %8 {offsets = [14, 0], sizes = [1, 32], strides = [1, 1]} : vector<15x32xf32> to vector<1x32xf32>
    %cst_97 = arith.constant dense<0.000000e+00> : vector<8xf32>
    %275 = vector.multi_reduction <add>, %272, %cst_97 [1] : vector<8x32xf32> to vector<8xf32>
    %276 = vector.shape_cast %275 : vector<8xf32> to vector<8x1xf32>
    %cst_98 = arith.constant 3.200000e+01 : f32
    %277 = vector.broadcast %cst_98 : f32 to vector<8x1xf32>
    %278 = arith.divf %276, %277 : vector<8x1xf32>
    %279 = arith.mulf %272, %272 : vector<8x32xf32>
    %cst_99 = arith.constant dense<0.000000e+00> : vector<8xf32>
    %280 = vector.multi_reduction <add>, %279, %cst_99 [1] : vector<8x32xf32> to vector<8xf32>
    %281 = vector.shape_cast %280 : vector<8xf32> to vector<8x1xf32>
    %cst_100 = arith.constant 3.200000e+01 : f32
    %282 = vector.broadcast %cst_100 : f32 to vector<8x1xf32>
    %283 = arith.divf %281, %282 : vector<8x1xf32>
    %284 = arith.mulf %278, %278 : vector<8x1xf32>
    %285 = arith.subf %283, %284 : vector<8x1xf32>
    %cst_101 = arith.constant 0.000000e+00 : f32
    %286 = vector.broadcast %cst_101 : f32 to vector<8x1xf32>
    %287 = arith.maximumf %285, %286 : vector<8x1xf32>
    %288 = vector.broadcast %278 : vector<8x1xf32> to vector<8x32xf32>
    %289 = arith.subf %272, %288 : vector<8x32xf32>
    %cst_102 = arith.constant 9.99999974E-6 : f32
    %290 = vector.broadcast %cst_102 : f32 to vector<8x1xf32>
    %291 = arith.addf %287, %290 : vector<8x1xf32>
    %292 = math.rsqrt %291 : vector<8x1xf32>
    %293 = vector.broadcast %292 : vector<8x1xf32> to vector<8x32xf32>
    %294 = arith.mulf %289, %293 : vector<8x32xf32>
    %295 = vector.broadcast %273 : vector<1x32xf32> to vector<8x32xf32>
    %296 = arith.mulf %294, %295 : vector<8x32xf32>
    %297 = vector.broadcast %274 : vector<1x32xf32> to vector<8x32xf32>
    %298 = arith.addf %296, %297 : vector<8x32xf32>
    %c0_103 = arith.constant 0 : index
    %c0_104 = arith.constant 0 : index
    %c0_105 = arith.constant 0 : index
    %299 = vector.load %arg9[%c0_103, %c0_104, %c0_105] : memref<1x8x32xf32, #tpu.memory_space<vmem>>, vector<1x8x32xf32>
    %300 = vector.shape_cast %299 : vector<1x8x32xf32> to vector<8x32xf32>
    %301 = vector.shape_cast %298 : vector<8x32xf32> to vector<1x8x32xf32>
    tpu.vector_store %arg9[%c0_103, %c0_104, %c0_105], %301 {strides = array<i32>} : memref<1x8x32xf32, #tpu.memory_space<vmem>>, vector<1x8x32xf32>,
    return
  }
  func.func @transform_0(%arg0: i32, %arg1: i32) -> (i32, i32, i32) {
    %c0_i32 = arith.constant 0 : i32
    %c0_i32_0 = arith.constant 0 : i32
    %c0_i32_1 = arith.constant 0 : i32
    %c0_i32_2 = arith.constant 0 : i32
    return %c0_i32, %c0_i32_0, %c0_i32_1 : i32, i32, i32
  }
  func.func @transform_1(%arg0: i32, %arg1: i32) -> (i32, i32, i32) {
    %c0_i32 = arith.constant 0 : i32
    %c0_i32_0 = arith.constant 0 : i32
    %c0_i32_1 = arith.constant 0 : i32
    return %arg0, %c0_i32, %c0_i32_0 : i32, i32, i32
  }
  func.func @transform_2(%arg0: i32, %arg1: i32) -> (i32, i32, i32, i32) {
    %c0_i32 = arith.constant 0 : i32
    %c0_i32_0 = arith.constant 0 : i32
    %c0_i32_1 = arith.constant 0 : i32
    %c0_i32_2 = arith.constant 0 : i32
    return %arg1, %c0_i32, %c0_i32_0, %c0_i32_1 : i32, i32, i32, i32
  }
  func.func @transform_3(%arg0: i32, %arg1: i32) -> (i32, i32, i32) {
    %c0_i32 = arith.constant 0 : i32
    %c0_i32_0 = arith.constant 0 : i32
    %c0_i32_1 = arith.constant 0 : i32
    return %arg1, %c0_i32, %c0_i32_0 : i32, i32, i32
  }
  func.func @transform_4(%arg0: i32, %arg1: i32) -> (i32, i32, i32) {
    %c0_i32 = arith.constant 0 : i32
    %c0_i32_0 = arith.constant 0 : i32
    %c0_i32_1 = arith.constant 0 : i32
    return %arg1, %c0_i32, %c0_i32_0 : i32, i32, i32
  }
  func.func @transform_5(%arg0: i32, %arg1: i32) -> (i32, i32, i32) {
    %c0_i32 = arith.constant 0 : i32
    %c0_i32_0 = arith.constant 0 : i32
    %c0_i32_1 = arith.constant 0 : i32
    return %arg1, %c0_i32, %c0_i32_0 : i32, i32, i32
  }
  func.func @transform_6(%arg0: i32, %arg1: i32) -> (i32, i32, i32) {
    %c0_i32 = arith.constant 0 : i32
    %c0_i32_0 = arith.constant 0 : i32
    %c0_i32_1 = arith.constant 0 : i32
    return %arg1, %c0_i32, %c0_i32_0 : i32, i32, i32
  }
  func.func @transform_7(%arg0: i32, %arg1: i32) -> (i32, i32, i32) {
    %c0_i32 = arith.constant 0 : i32
    %c0_i32_0 = arith.constant 0 : i32
    %c0_i32_1 = arith.constant 0 : i32
    return %arg0, %c0_i32, %c0_i32_0 : i32, i32, i32
  }
}

</mosaic_0001>

<bundles_post_ra>
// kernel: detr_query_forward.1
= control target key start
LH: loop header
LB: loop body
LE: loop exit
PB: predicated region body
PF: predicated region fallthrough
CT: control target
= control target key end

     0   :  { %s5002_s0 = inlined_call_operand.vmem [shape: f32[1,8,32], index: 0, kind: input, shape index: {}]   ;;  %s5003_s1 = inlined_call_operand.vmem [shape: f32[2,32,32], index: 1, kind: input, shape index: {}]   ;;  %s5004_s2 = inlined_call_operand.vmem [shape: bf16[2,8,32,32], index: 2, kind: input, shape index: {}]   ;;  %s5005_s3 = inlined_call_operand.vmem [shape: bf16[2,32,2048], index: 3, kind: input, shape index: {}]   ;;  %s5006_s4 = inlined_call_operand.vmem [shape: bf16[2,2048,32], index: 4, kind: input, shape index: {}]   ;;  %s5007_s5 = inlined_call_operand.vmem [shape: f32[2,1,2048], index: 5, kind: input, shape index: {}]   ;;  %s5008_s6 = inlined_call_operand.vmem [shape: f32[2,15,32], index: 6, kind: input, shape index: {}]   ;;  %s5009_s7 = inlined_call_operand.hbm [shape: f32[2,8,32], index: 7, kind: output, shape index: {}]  }
   0x1   :  { %5017 = sst [smem:[#allocation13_spill]] %s5003_s1 }
   0x2   :  { %12 = vsyncpa [#allocation3], 0 }
   0x3   :  { %14 = vsyncpa [#allocation3 + $0x1], 0  ;;  %s4407_s24 = smov 0   ;;  %s4409_s25 = smov 0  }
   0x4   :  { %s4411_s26 = smov 0   ;;  %s4413_s27 = smov 0  }
   0x5   :  { %s4415_s28 = smov 0   ;;  %s4417_s29 = smov 0  }
   0x6   :  { %s4419_s30 = smov 0   ;;  %s4421_s8 = smov 0  }
   0x7 LB: > { %5018 = sst [smem:[#allocation5_spill]] %s4330_s24  ;;  %s3168_s9 = sadd.s32 4294967295, %s4358_s8   ;;  %s4358_s8 = sphi %s4421_s8, %s20_s8   ;;  %s4354_s30 = sphi %s4419_s30, %s5037_s30   ;;  %s4350_s29 = sphi %s4417_s29, %s5036_s29   ;;  %s4346_s28 = sphi %s4415_s28, %s5035_s28   ;;  %s4342_s27 = sphi %s4413_s27, %s5034_s27   ;;  %s4338_s26 = sphi %s4411_s26, %s5033_s26   ;;  %s4334_s25 = sphi %s4409_s25, %s5039_s25   ;;  %s4330_s24 = sphi %s4407_s24, %s5038_s24  }
   0x8   : > { %5019 = sst [smem:[#allocation6_spill]] %s4338_s26  ;;  %s3169_s10 = sadd.s32 4294967294, %s4358_s8  }
   0x9   : > { %5020 = sst [smem:[#allocation7_spill]] %s4350_s29  ;;  %s29_s11 = sadd.s32 1, %s4350_s29 }
   0xa   : > { %5021 = sst [smem:[#allocation8_spill]] %s4354_s30  ;;  %p30_p0 = scmp.ge.s32.totalorder %s29_s11, 2 }
   0xb   : > { %s32_s12 = sadd.s32 1, %s4354_s30  ;;  %p226_p1 = scmp.ne.s32.totalorder %s4338_s26, %s4334_s25 }
   0xc   : > { %p227_p2 = scmp.eq.s32.totalorder %s3168_s9, 3  ;;  %s5041_s11 = smov (%p30_p0, %s29_s11), 0 }
   0xd   : > { %5022 = sst [smem:[#allocation9_spill]] %s5041_s11  ;;  %s5043_s12 = smov (!%p30_p0, %s32_s12), %s4354_s30 }
   0xe   : > { %p4456_p3 = por %p227_p2, %p226_p1  ;;  %p232_p4 = scmp.ne.s32.totalorder %s4334_s25, %s4330_s24 }
   0xf   : > { %p34_p5 = scmp.ge.s32.totalorder %s5043_s12, 2  ;;  %p233_p6 = scmp.eq.s32.totalorder %s3169_s10, 3 }
  0x10   : > { %p3172_p7 = scmp.ge.s32.totalorder %s4358_s8, 1  ;;  %p301_p8 = scmp.lt.s32.totalorder %s4358_s8, 5 }
  0x11   : > { %s5045_s12 = smov (%p34_p5, %s5043_s12), 0  ;;  %p4466_p9 = por %p233_p6, %p232_p4 }
  0x12   : > { %5024 = sst [smem:[#allocation10_spill]] %s5045_s12  ;;  %p302_p10 = pnand %p3172_p7, %p301_p8 }
  0x13   : > { %s5025_s14 = scalar_select %p4466_p9, 1, 0 }
  0x14   : > { %s213_s15 = ssub.s32 %s4354_s30, %s5045_s12  ;;  %s216_s16 = sadd.s32 1, %s4338_s26 }
  0x15   : > { %5026 = sst [smem:[#allocation11_spill]] %s5025_s14  ;;  %p214_p11 = scmp.eq.s32.totalorder %s213_s15, 0 }
  0x16   : > { %305 = sbr.rel (%p302_p10) target bundleno = 2919 (0xb67), region = 48  ;;  %s5013_s18 = sand.u32 (!%p302_p10), 1, %s4334_s25  }
  0x17   : > { %s4474_s17 = scalar_select %p214_p11, %s4338_s26, %s216_s16  }
  0x18   : > { %p357_p12 = scmp.lt.s32.totalorder (!%p302_p10), %s4346_s28, 1  ;;  %s3173_s19 = sshll.u32 (!%p302_p10), %s5013_s18, 3 }
  0x19   : > { %5027 = sst [smem:[#allocation12_spill]] %s4474_s17  ;;  %p362_p13 = scmp.lt.s32.totalorder (!%p302_p10), %s4342_s27, 1 }
  0x1a   : > { %s5028_s1 = sld [smem:[#allocation13_spill]] (!%p302_p10)  ;;  %s4513_s29 = scalar_lea.vmem (!%p302_p10), [#allocation2], %s3173_s19 }
  0x1b   : > { %s358_s20 = scalar_select %p357_p12, %s4346_s28, 1 }
  0x1c   : > { %s363_s21 = scalar_select %p362_p13, %s4342_s27, 1 }
  0x1d   : > { %s3964_s22 = sshll.u32 %s358_s20, 5  ;;  %p3185_p0 = scmp.ne.s32.totalorder %s4342_s27, 0 }
  0x1e   : > { %s3965_s15 = sshll.u32 %s363_s21, 7  ;;  %s3966_s30 = sshll.u32 %s363_s21, 8 }
  0x1f   : > { %s4491_s11 = scalar_lea.vmem %s5004_s2, %s3965_s15  ;;  %s4496_s18 = scalar_lea.vmem %s5005_s3, %s3966_s30 }
  0x20   : > { %s4486_s10 = scalar_lea.vmem %s5028_s1, %s3964_s22  ;;  %s3967_s26 = sshll.u32 %s363_s21, 10 }
  0x21   : > { %s4501_s24 = scalar_lea.vmem %s5006_s4, %s3967_s26  ;;  %s3182_s22 = sshll.u32 %s363_s21, 4 }
  0x22   : > { %s4506_s1 = scalar_lea.vmem %s5007_s5, %s3182_s22  ;;  %s4511_s16 = scalar_lea.vmem %s5008_s6, %s3182_s22 }
  0x23   : > { %390 = sbr.rel (%p3185_p0) target bundleno = 42 (0x2a), region = 52 }
  0x28   : > { %v391_v0 = vld [vmem:[%s5002_s0] sm:$0xff]  ;;  %vm392_vm0 = vcmask 261120  }
  0x29   : > { %393 = vst.msk [vmem:[%s4513_s29] sm:$0xff] %vm392_vm0, %v391_v0 }
  0x2a PF: > { %v3970_v1 = vld [vmem:[%s4491_s11 + $0x8] sm:$0xff]  ;;  %v3972_v2 = vld [vmem:[%s4491_s11 + $0x18] sm:$0xff]  ;;  %v3969_v3 = vld [vmem:[%s4491_s11] sm:$0xff]  ;;  %vm434_vm1 = vcmask 261120   ;;  %vm506_vm2 = vcmask 64512   ;;  %s4360_s26 = smov 112  }
  0x2b   : > { %444 = vmatpush.bf16.msra.mxu0 %v3970_v1  ;;  %470 = vmatpush.bf16.msra.mxu1 %v3972_v2  ;;  %v3971_v4 = vld [vmem:[%s4491_s11 + $0x10] sm:$0xff]  ;;  %v4532_v7 = vld [vmem:[%s4511_s16] sm:$0xff]  ;;  %s4361_s27 = smov 120   ;;  %s4362_s17 = smov 104   ;;  %v3974_v23 = vld [vmem:[%s4491_s11 + $0x28] sm:$0xff]  ;;  %vm541_vm3 = vcmask 1043456  }
  0x2c   : > { %v421_v8 = vperm.slane %v4532_v7, 0  ;;  %v451_v9 = vperm.slane %v4532_v7, 1  ;;  %496 = vmatpush.bf16.msra.mxu2 %v3974_v23  ;;  %v3973_v36 = vld [vmem:[%s4491_s11 + $0x20] sm:$0xff]  ;;  %v477_v51 = vperm.slane %v4532_v7, 2  ;;  %s4363_s19 = smov 8   ;;  %s4364_s21 = smov 24  }
  0x2d   : > { %s4365_s20 = smov 16   ;;  %vm748_vm4 = vcmask 130048   ;;  %vm750_vm5 = vcmask 195584   ;;  %s4284_s30 = scalar_lea.hbm %s5009_s7, 16 }
  0x2f   : > { %445 = vmatpush.bf16.msra.mxu0 %v3969_v3  ;;  %471 = vmatpush.bf16.msra.mxu1 %v3971_v4 }
  0x30   : > { %v4525_v5 = vld [vmem:[%s4513_s29] sm:$0xff]  ;;  %497 = vmatpush.bf16.msra.mxu2 %v3973_v36 }
  0x31   : > { %v420_v6 = vpack.c.bf16 %v4525_v5, %v4525_v5 }
  0x33   : > { %3206 = vmatmul.msk.bf16.vlgmr.msra.gmra.mxu0 %vm434_vm1, %v420_v6  ;;  %3215 = vmatmul.msk.bf16.vlgmr.msra.gmra.mxu1 %vm434_vm1, %v420_v6 }
  0x34   : > { %3224 = vmatmul.msk.bf16.vlgmr.msra.gmra.mxu2 %vm434_vm1, %v420_v6 }
  0xb0   : > { %v447_v10 = vpop.f32.mrf.mxu0  ;;  %v473_v11 = vpop.f32.mrf.mxu1 }
  0xb1   : > { %v448_v12 = vadd.f32 %v447_v10, %v421_v8  ;;  %v474_v13 = vadd.f32 %v473_v11, %v451_v9 }
  0xb3   : > { %v503_v14 = vpack.c.bf16 %v448_v12, %v448_v12  ;;  %v504_v15 = vpack.c.bf16 %v474_v13, %v474_v13 }
  0xb5   : > { %v559_v16 = vunpack.c.l.b16 %v503_v14  ;;  %v564_v17 = vunpack.c.l.b16 %v504_v15  ;;  %v511_v18 = vsel %vm506_vm2, %v504_v15, 0 }
  0xb6   : > { %520 = vmatpush.bf16.xpose.msra.mxu3 %v511_v18 }
  0xb7   : > { %v560_v19 = vpack.c.b16 %v559_v16, %v559_v16  ;;  %v565_v20 = vpack.c.b16 %v564_v17, %v564_v17  ;;  %v499_v52 = vpop.f32.mrf.mxu2 }
  0xb8   : > { %v449_v21 = vpop.f32.mrf.mxu0  ;;  %v475_v22 = vpop.f32.mrf.mxu1  ;;  %v500_v53 = vadd.f32 %v499_v52, %v477_v51  ;;  %v3980_v51 = vld [vmem:[%s4491_s11 + $0x58] sm:$0xff]  ;;  %v3979_v52 = vld [vmem:[%s4491_s11 + $0x50] sm:$0xff] }
  0xb9   : > { %625 = vrot.lane.b32.xlu1 %v565_v20, %s4360_s26  ;;  %566 = vrot.lane.b32.xlu0 %v565_v20, %s4361_s27 }
  0xba   : > { %623 = vrot.lane.b32.xlu2 %v560_v19, %s4360_s26  ;;  %v505_v54 = vpack.c.bf16 %v500_v53, %v500_v53  ;;  %v395_v53 = vld [vmem:[%s4486_s10] sm:$0xff] }
  0xbc   : > { %v600_v55 = vunpack.c.l.b16 %v505_v54  ;;  %v543_v56 = vsel %vm541_vm3, %v505_v54, 0  ;;  %v396_v54 = vld [vmem:[%s4486_s10 + $0x8] sm:$0xff] }
  0xbd   : > { %3225 = vmatmul.msk.bf16.vlgmr.msra.gmra.mxu3 %vm506_vm2, %v503_v14  ;;  %552 = vmatpush.bf16.msrb.mxu0 %v543_v56  ;;  %v397_v56 = vld [vmem:[%s4486_s10 + $0x10] sm:$0xff] }
  0xbe   : > { %v601_v57 = vpack.c.b16 %v600_v55, %v600_v55  ;;  %v4586_v55 = vpack.c.bf16 %v396_v54, %v395_v53 }
  0xbf   : > { %v501_v58 = vpop.f32.mrf.mxu2 }
  0xc0   : > { %v753_v58 = vperm.slane %v4532_v7, 3 }
  0xc1   : > { %681 = vrot.lane.b32.xlu1 %v565_v20, %s4362_s17  ;;  %561 = vrot.lane.b32.xlu0 %v560_v19, %s4361_s27 }
  0xc2   : > { %679 = vrot.lane.b32.xlu2 %v560_v19, %s4362_s17 }
 0x114   : > { %v624_v28 = vpop.permute.xlu2 %623 }
 0x11c   : > { %v680_v34 = vpop.permute.xlu2 %679 }
 0x12b   : > { %v626_v24 = vpop.permute.xlu1 %625  ;;  %v567_v25 = vpop.permute.xlu0 %566 }
 0x12c   : > { %v572_v26 = vsel %vm506_vm2, %v567_v25, 0  ;;  %v631_v27 = vsel %vm506_vm2, %v626_v24, 0 }
 0x12d   : > { %581 = vmatpush.bf16.xpose.msrb.mxu1 %v572_v26  ;;  %640 = vmatpush.bf16.xpose.msrb.mxu3 %v631_v27 }
 0x133   : > { %v682_v29 = vpop.permute.xlu1 %681  ;;  %v562_v30 = vpop.permute.xlu0 %561 }
 0x134   : > { %v687_v31 = vsel %vm506_vm2, %v682_v29, 0  ;;  %3227 = vmatmul.msk.bf16.vlgmr.msrb.gmra.mxu1 %vm506_vm2, %v562_v30  ;;  %3229 = vmatmul.msk.bf16.vlgmr.msrb.gmra.mxu3 %vm506_vm2, %v624_v28 }
 0x135   : > { %696 = vmatpush.bf16.xpose.msra.mxu1 %v687_v31 }
 0x13d   : > { %896 = vmatpush.bf16.msrb.mxu1 %v3980_v51 }
 0x140   : > { %v522_v32 = vpop.f32.mrf.mxu3 }
 0x141   : > { %v526_v33 = vsel %vm506_vm2, %v522_v32, -inf  ;;  %897 = vmatpush.bf16.msrb.mxu1 %v3979_v52 }
 0x142   : > { %527 = vmax.xlane.f32.xlu1 %v526_v33 }
 0x144   : > { %3231 = vmatmul.msk.bf16.vlgmr.msra.gmra.mxu1 %vm506_vm2, %v680_v34 }
 0x148   : > { %v524_v35 = vpop.f32.mrf.mxu3 }
 0x154   : > { %3275 = vmatmul.msk.bf16.vlgmr.msrb.gmra.mxu1 %vm434_vm1, %v4586_v55 }
 0x1b1   : > { %v583_v37 = vpop.f32.mrf.mxu1 }
 0x1b2   : > { %v587_v38 = vsel %vm506_vm2, %v583_v37, -inf }
 0x1b3   : > { %588 = vmax.xlane.f32.xlu0 %v587_v38 }
 0x1b5   : > { %v528_v39 = vpop.xlane.xlu1 %527 }
 0x1b6   : > { %v529_v40 = vsub.f32 %v522_v32, %v528_v39 }
 0x1b7   : > { %v642_v41 = vpop.f32.mrf.mxu3 }
 0x1b8   : > { %v530_v42 = vmul.f32 1.442695, %v529_v40  ;;  %v646_v50 = vsel %vm506_vm2, %v642_v41, -inf }
 0x1b9   : > { %v585_v43 = vpop.f32.mrf.mxu1 }
 0x1ba   : > { %4223 = vpow2.f32 %v530_v42  ;;  %v3976_v42 = vld [vmem:[%s4491_s11 + $0x38] sm:$0xff]  ;;  %v3975_v43 = vld [vmem:[%s4491_s11 + $0x30] sm:$0xff] }
 0x1bb   : > { %775 = vmatpush.bf16.msra.mxu3 %v3976_v42 }
 0x1bf   : > { %v644_v44 = vpop.f32.mrf.mxu3  ;;  %776 = vmatpush.bf16.msra.mxu3 %v3975_v43 }
 0x1c0   : > { %v4224_v45 = vpop.eup %4223 }
 0x1c1   : > { %v698_v46 = vpop.f32.mrf.mxu1  ;;  %v532_v47 = vsel %vm506_vm2, %v4224_v45, 0.0 }
 0x1c2   : > { %533 = vadd.xlane.f32.xlu1 %v532_v47  ;;  %v702_v48 = vsel %vm506_vm2, %v698_v46, -inf }
 0x1c3   : > { %703 = vmax.xlane.f32.xlu2 %v702_v48 }
 0x1c9   : > { %v700_v49 = vpop.f32.mrf.mxu1 }
 0x1cb   : > { %647 = vmax.xlane.f32.xlu2 %v646_v50 }
 0x1e3   : > { %602 = vrot.lane.b32.xlu2 %v601_v57, %s4361_s27 }
 0x226   : > { %v589_v59 = vpop.xlane.xlu0 %588 }
 0x227   : > { %v590_v60 = vsub.f32 %v583_v37, %v589_v59 }
 0x229   : > { %v591_v61 = vmul.f32 1.442695, %v590_v60 }
 0x22b   : > { %4225 = vpow2.f32 %v591_v61 }
 0x231   : > { %v4226_v62 = vpop.eup %4225 }
 0x232   : > { %v593_v63 = vsel %vm506_vm2, %v4226_v62, 0.0 }
 0x233   : > { %594 = vadd.xlane.f32.xlu0 %v593_v63 }
 0x235   : > { %v534_v0 = vpop.xlane.xlu1 %533 }
 0x236   : > { %4227 = vrcp.f32 %v534_v0  ;;  %v704_v1 = vpop.xlane.xlu2 %703 }
 0x237   : > { %v705_v2 = vsub.f32 %v698_v46, %v704_v1 }
 0x239   : > { %v706_v3 = vmul.f32 1.442695, %v705_v2 }
 0x23b   : > { %4229 = vpow2.f32 %v706_v3  ;;  %v4366_v3 = vmov 32.0  }
 0x23c   : > { %v4228_v4 = vpop.eup %4227 }
 0x23d   : > { %v536_v6 = vmul.f32 %v4228_v4, %v4224_v45 }
 0x23e   : > { %v648_v8 = vpop.xlane.xlu2 %647 }
 0x23f   : > { %v649_v9 = vsub.f32 %v642_v41, %v648_v8  ;;  %v537_v10 = vpack.c.bf16 %v536_v6, %v536_v6 }
 0x241   : > { %v4230_v11 = vpop.eup %4229  ;;  %v650_v12 = vmul.f32 1.442695, %v649_v9  ;;  %3226 = vmatmul.msk.bf16.vlgmr.msrb.gmra.mxu0 %vm506_vm2, %v537_v10 }
 0x242   : > { %v708_v13 = vsel %vm506_vm2, %v4230_v11, 0.0 }
 0x243   : > { %4231 = vpow2.f32 %v650_v12  ;;  %709 = vadd.xlane.f32.xlu0 %v708_v13 }
 0x246   : > { %v603_v16 = vpop.permute.xlu2 %602 }
 0x247   : > { %v608_v17 = vsel %vm541_vm3, %v603_v16, 0 }
 0x248   : > { %617 = vmatpush.bf16.msrb.mxu2 %v608_v17 }
 0x249   : > { %v4232_v14 = vpop.eup %4231 }
 0x24a   : > { %v652_v15 = vsel %vm506_vm2, %v4232_v14, 0.0 }
 0x24b   : > { %653 = vadd.xlane.f32.xlu1 %v652_v15 }
 0x257   : > { %714 = vrot.lane.b32.xlu0 %v601_v57, %s4362_s17 }
 0x264   : > { %658 = vrot.lane.b32.xlu1 %v601_v57, %s4360_s26  ;;  %v398_v57 = vld [vmem:[%s4486_s10 + $0x18] sm:$0xff]  ;;  %s3035_s10 = sshll.u32 %s4513_s29, 4  ;;  %s3036_s10 = int_to_ptr.vmem [resolvable:$true] %s3035_s10 }
 0x265   : > { %v4593_v59 = vpack.c.bf16 %v398_v57, %v397_v56 }
 0x267   : > { %3276 = vmatmul.msk.bf16.gmra.mxu1 %vm434_vm1, %v4593_v59 }
 0x2a6   : > { %v595_v18 = vpop.xlane.xlu0 %594 }
 0x2a7   : > { %4233 = vrcp.f32 %v595_v18 }
 0x2ad   : > { %v4234_v19 = vpop.eup %4233 }
 0x2ae   : > { %v597_v20 = vmul.f32 %v4234_v19, %v4226_v62  ;;  %v899_v19 = vpop.f32.mrf.mxu1 }
 0x2b0   : > { %v598_v21 = vpack.c.bf16 %v597_v20, %v597_v20  ;;  %v871_v20 = vperm.slane %v4532_v7, 5 }
 0x2b2   : > { %3228 = vmatmul.msk.bf16.vlgmr.msrb.gmra.mxu2 %vm506_vm2, %v598_v21 }
 0x2b6   : > { %v710_v22 = vpop.xlane.xlu0 %709 }
 0x2b7   : > { %4235 = vrcp.f32 %v710_v22  ;;  %v900_v22 = vadd.f32 %v899_v19, %v871_v20 }
 0x2bd   : > { %v4236_v24 = vpop.eup %4235 }
 0x2be   : > { %v554_v23 = vpop.f32.mrf.mxu0  ;;  %v712_v26 = vmul.f32 %v4236_v24, %v4230_v11  ;;  %v654_v27 = vpop.xlane.xlu1 %653  ;;  %v3978_v11 = vld [vmem:[%s4491_s11 + $0x48] sm:$0xff]  ;;  %v942_v24 = vpack.c.bf16 %v900_v22, %v900_v22 }
 0x2bf   : > { %4237 = vrcp.f32 %v654_v27 }
 0x2c0   : > { %v713_v30 = vpack.c.bf16 %v712_v26, %v712_v26  ;;  %4239 = vrcp.f32 %v4366_v3  ;;  %v954_v27 = vunpack.c.l.b16 %v942_v24 }
 0x2c5   : > { %v4238_v31 = vpop.eup %4237 }
 0x2c6   : > { %v556_v25 = vpop.f32.mrf.mxu0  ;;  %v656_v32 = vmul.f32 %v4238_v31, %v4232_v14  ;;  %v4240_v4 = vpop.eup %4239 }
 0x2c7   : > { %v787_v6 = vmul.f32 32.0, %v4240_v4  ;;  %vm791_vm6 = vweird.f32 %v4240_v4  ;;  %v901_v25 = vpop.f32.mrf.mxu1 }
 0x2c8   : > { %v657_v35 = vpack.c.bf16 %v656_v32, %v656_v32  ;;  %v902_v26 = vadd.f32 %v901_v25, %v871_v20 }
 0x2c9   : > { %v715_v28 = vpop.permute.xlu0 %714  ;;  %v788_v8 = vsub.f32 1.0, %v787_v6 }
 0x2ca   : > { %v720_v29 = vsel %vm541_vm3, %v715_v28, 0  ;;  %v943_v28 = vpack.c.bf16 %v902_v26, %v902_v26 }
 0x2cb   : > { %729 = vmatpush.bf16.msra.mxu2 %v720_v29  ;;  %v789_v9 = vmul.f32 %v4240_v4, %v788_v8 }
 0x2cc   : > { %v955_v31 = vunpack.c.l.b16 %v943_v28 }
 0x2cd   : > { %v790_v10 = vadd.f32 %v4240_v4, %v789_v9 }
 0x2ce   : > { %3232 = vmatmul.msk.bf16.vlgmr.msra.gmra.mxu2 %vm506_vm2, %v713_v30 }
 0x2cf   : > { %v4601_v12 = vsel %vm791_vm6, %v4240_v4, %v790_v10 }
 0x2d6   : > { %v659_v33 = vpop.permute.xlu1 %658 }
 0x2d7   : > { %v664_v34 = vsel %vm541_vm3, %v659_v33, 0  ;;  %v958_v33 = vpack.c.b16 %v955_v31, %v954_v27 }
 0x2d8   : > { %673 = vmatpush.bf16.msra.mxu0 %v664_v34 }
 0x2d9   : > { %v964_v57 = vsel %vm506_vm2, %v958_v33, 0 }
 0x2db   : > { %3230 = vmatmul.msk.bf16.vlgmr.msra.gmra.mxu0 %vm506_vm2, %v657_v35 }
 0x2dc   : > { %862 = vmatpush.bf16.msrb.mxu0 %v3978_v11 }
 0x2e4   : > { %v904_v34 = vpop.f32.mrf.mxu1 }
 0x335   : > { %v619_v36 = vpop.f32.mrf.mxu2 }
 0x336   : > { %736 = vrot.lane.b32.xlu2 %v619_v36, %s4363_s19  ;;  %v4610_v36 = vld [vmem:[%s4511_s16 + $0x8] sm:$0x7f] }
 0x33d   : > { %v621_v37 = vpop.f32.mrf.mxu2 }
 0x351   : > { %v731_v38 = vpop.f32.mrf.mxu2 }
 0x352   : > { %744 = vrot.lane.b32.xlu2 %v731_v38, %s4364_s21  ;;  %v905_v38 = vadd.f32 %v904_v34, %v871_v20 }
 0x354   : > { %v944_v43 = vpack.c.bf16 %v905_v38, %v905_v38 }
 0x358   : > { %v675_v39 = vpop.f32.mrf.mxu0 }
 0x359   : > { %740 = vrot.lane.b32.xlu0 %v675_v39, %s4365_s20  ;;  %v733_v40 = vpop.f32.mrf.mxu2 }
 0x360   : > { %v677_v41 = vpop.f32.mrf.mxu0 }
 0x361   : > { %v815_v41 = vperm.slane %v4610_v36, 1 }
 0x390   : > { %v737_v44 = vpop.permute.xlu2 %736 }
 0x391   : > { %v747_v45 = vsel %vm506_vm2, %v554_v23, %v737_v44 }
 0x3ac   : > { %v745_v47 = vpop.permute.xlu2 %744 }
 0x3cb   : > { %v741_v46 = vpop.permute.xlu0 %740 }
 0x3cc   : > { %v749_v48 = vsel %vm748_vm4, %v747_v45, %v741_v46  ;;  %v817_v45 = vperm.slane %v4610_v36, 2  ;;  %v906_v46 = vpop.f32.mrf.mxu1 }
 0x3cd   : > { %v751_v49 = vsel %vm750_vm5, %v749_v48, %v745_v47  ;;  %v907_v47 = vadd.f32 %v906_v46, %v871_v20 }
 0x3ce   : > { %v752_v50 = vpack.c.bf16 %v751_v49, %v751_v49  ;;  %v956_v49 = vunpack.c.l.b16 %v944_v43 }
 0x3d0   : > { %3241 = vmatmul.msk.bf16.vlgmr.msra.gmra.mxu3 %vm434_vm1, %v752_v50  ;;  %v945_v50 = vpack.c.bf16 %v907_v47, %v907_v47 }
 0x3d2   : > { %v957_v52 = vunpack.c.l.b16 %v945_v50 }
 0x3d4   : > { %v959_v54 = vpack.c.b16 %v957_v52, %v956_v49 }
 0x3d6   : > { %1029 = vrot.lane.b32.xlu2 %v959_v54, %s4361_s27  ;;  %v967_v56 = vsel %vm506_vm2, %v959_v54, 0 }
 0x3d7   : > { %975 = vmatpush.bf16.xpose.msrb.mxu3 %v967_v56 }
 0x3de   : > { %1027 = vrot.lane.b32.xlu2 %v958_v33, %s4361_s27 }
 0x3df   : > { %976 = vmatpush.bf16.xpose.msrb.mxu3 %v964_v57 }
 0x3e6   : > { %1091 = vrot.lane.b32.xlu2 %v959_v54, %s4360_s26 }
 0x3ee   : > { %1153 = vrot.lane.b32.xlu2 %v959_v54, %s4362_s17 }
 0x453   : > { %v778_v60 = vpop.f32.mrf.mxu3 }
 0x454   : > { %v779_v61 = vadd.f32 %v778_v60, %v753_v58  ;;  %v1030_v58 = vpop.permute.xlu2 %1029 }
 0x455   : > { %v1038_v60 = vsel %vm506_vm2, %v1030_v58, 0 }
 0x456   : > { %v782_v62 = vadd.f32 %v779_v61, %v4525_v5  ;;  %v3977_v5 = vld [vmem:[%s4491_s11 + $0x40] sm:$0xff]  ;;  %1046 = vmatpush.bf16.xpose.msra.mxu3 %v1038_v60  ;;  %v3982_v61 = vld [vmem:[%s4491_s11 + $0x68] sm:$0xff] }
 0x457   : > { %863 = vmatpush.bf16.msrb.mxu0 %v3977_v5  ;;  %928 = vmatpush.bf16.msrb.mxu2 %v3982_v61 }
 0x458   : > { %v783_v63 = vsel %vm434_vm1, %v782_v62, 0.0  ;;  %v794_v0 = vmul.f32 %v782_v62, %v782_v62 }
 0x459   : > { %784 = vadd.xlane.f32.xlu1 %v783_v63 }
 0x45a   : > { %v795_v1 = vsel %vm434_vm1, %v794_v0, 0.0 }
 0x45b   : > { %v780_v2 = vpop.f32.mrf.mxu3  ;;  %796 = vadd.xlane.f32.xlu0 %v795_v1 }
 0x45c   : > { %v1028_v1 = vpop.permute.xlu2 %1027 }
 0x45d   : > { %v1035_v2 = vsel %vm506_vm2, %v1028_v1, 0 }
 0x45e   : > { %1047 = vmatpush.bf16.xpose.msra.mxu3 %v1035_v2 }
 0x464   : > { %v1092_v9 = vpop.permute.xlu2 %1091 }
 0x465   : > { %v1100_v10 = vsel %vm506_vm2, %v1092_v9, 0 }
 0x466   : > { %1108 = vmatpush.bf16.xpose.msra.mxu1 %v1100_v10 }
 0x46f   : > { %1151 = vrot.lane.b32.xlu0 %v958_v33, %s4362_s17 }
 0x472   : > { %1089 = vrot.lane.b32.xlu1 %v958_v33, %s4360_s26 }
 0x4cc   : > { %v785_v13 = vpop.xlane.xlu1 %784 }
 0x4cd   : > { %v793_v14 = vmul.f32 %v4601_v12, %v785_v13  ;;  %v1154_v13 = vpop.permute.xlu2 %1153 }
 0x4ce   : > { %v797_v15 = vpop.xlane.xlu0 %796 }
 0x4cf   : > { %v799_v16 = vmul.f32 %v793_v14, %v793_v14  ;;  %v798_v17 = vmul.f32 %v797_v15, %v4601_v12  ;;  %v802_v40 = vsub.f32 %v782_v62, %v793_v14  ;;  %v840_v62 = vperm.slane %v4532_v7, 4 }
 0x4d0   : > { %v1162_v14 = vsel %vm506_vm2, %v1154_v13, 0 }
 0x4d1   : > { %v800_v18 = vsub.f32 %v798_v17, %v799_v16  ;;  %v3981_v17 = vld [vmem:[%s4491_s11 + $0x60] sm:$0xff] }
 0x4d2   : > { %929 = vmatpush.bf16.msrb.mxu2 %v3981_v17 }
 0x4d3   : > { %v801_v21 = vmax.f32 %v800_v18, 0.0 }
 0x4d5   : > { %v803_v23 = vadd.f32 1e-05, %v801_v21  ;;  %3285 = vmatmul.msk.bf16.vlgmr.msrb.gmra.mxu2 %vm434_vm1, %v4586_v55  ;;  %v909_v55 = vperm.slane %v4532_v7, 6 }
 0x4d7   : > { %4241 = vrsqrt.f32 %v803_v23  ;;  %vm810_vm8 = vweird.f32 %v803_v23 }
 0x4dd   : > { %v4242_v29 = vpop.eup %4241 }
 0x4de   : > { %v805_v30 = vmul.f32 %v4242_v29, %v803_v23  ;;  %vm811_vm7 = vweird.f32 %v4242_v29 }
 0x4df   : > { %vm812_vm9 = vmor %vm810_vm8, %vm811_vm7 }
 0x4e0   : > { %v806_v32 = vmul.f32 %v4242_v29, %v805_v30 }
 0x4e1   : > { %v1152_v15 = vpop.permute.xlu0 %1151 }
 0x4e2   : > { %v807_v35 = vmul.f32 0.5, %v806_v32  ;;  %v1159_v16 = vsel %vm506_vm2, %v1152_v15, 0 }
 0x4e4   : > { %v808_v37 = vsub.f32 1.5, %v807_v35  ;;  %v1090_v11 = vpop.permute.xlu1 %1089 }
 0x4e5   : > { %v1097_v5 = vsel %vm506_vm2, %v1090_v11, 0  ;;  %3286 = vmatmul.msk.bf16.gmra.mxu2 %vm434_vm1, %v4593_v59 }
 0x4e6   : > { %v809_v39 = vmul.f32 %v4242_v29, %v808_v37  ;;  %1109 = vmatpush.bf16.xpose.msra.mxu1 %v1097_v5 }
 0x4e8   : > { %v813_v42 = vsel %vm812_vm9, %v4242_v29, %v809_v39 }
 0x4e9   : > { %v814_v44 = vmul.f32 %v813_v42, %v802_v40 }
 0x4eb   : > { %v816_v48 = vmul.f32 %v815_v41, %v814_v44 }
 0x4ed   : > { %v4614_v51 = vadd.f32 %v817_v45, %v816_v48 }
 0x4ef   : > { %v839_v53 = vpack.c.bf16 %v4614_v51, %v4614_v51 }
 0x4f1   : > { %3266 = vmatmul.msk.bf16.vlgmr.msrb.gmra.mxu0 %vm434_vm1, %v839_v53 }
 0x558   : > { %v931_v24 = vpop.f32.mrf.mxu2 }
 0x559   : > { %v932_v27 = vadd.f32 %v931_v24, %v909_v55 }
 0x55b   : > { %v946_v33 = vpack.c.bf16 %v932_v27, %v932_v27 }
 0x55d   : > { %v998_v42 = vunpack.c.l.b16 %v946_v33 }
 0x560   : > { %v933_v25 = vpop.f32.mrf.mxu2 }
 0x561   : > { %v934_v28 = vadd.f32 %v933_v25, %v909_v55 }
 0x563   : > { %v947_v34 = vpack.c.bf16 %v934_v28, %v934_v28 }
 0x565   : > { %v999_v43 = vunpack.c.l.b16 %v947_v34 }
 0x567   : > { %v1002_v46 = vpack.c.b16 %v999_v43, %v998_v42  ;;  %v3983_v42 = vld [vmem:[%s4491_s11 + $0x70] sm:$0xff] }
 0x568   : > { %v936_v26 = vpop.f32.mrf.mxu2 }
 0x569   : > { %v937_v59 = vadd.f32 %v936_v26, %v909_v55 }
 0x56b   : > { %v948_v29 = vpack.c.bf16 %v937_v59, %v937_v59 }
 0x56d   : > { %v1000_v35 = vunpack.c.l.b16 %v948_v29 }
 0x56e   : > { %v865_v63 = vpop.f32.mrf.mxu0 }
 0x56f   : > { %v866_v0 = vadd.f32 %v865_v63, %v840_v62 }
 0x570   : > { %v938_v30 = vpop.f32.mrf.mxu2 }
 0x571   : > { %v941_v3 = vpack.c.bf16 %v866_v0, %v866_v0  ;;  %v939_v31 = vadd.f32 %v938_v30, %v909_v55 }
 0x573   : > { %v1023_v4 = vunpack.c.l.b16 %v941_v3  ;;  %3287 = vmatmul.msk.bf16.vlgmr.msrb.gmra.mxu3 %vm506_vm2, %v941_v3  ;;  %v949_v37 = vpack.c.bf16 %v939_v31, %v939_v31 }
 0x574   : > { %1170 = vmatpush.bf16.xpose.msrb.mxu3 %v1162_v14 }
 0x575   : > { %v1024_v6 = vpack.c.b16 %v1023_v4, %v1023_v4  ;;  %v1001_v40 = vunpack.c.l.b16 %v949_v37 }
 0x576   : > { %v867_v8 = vpop.f32.mrf.mxu0 }
 0x577   : > { %1025 = vrot.lane.b32.xlu2 %v1024_v6, %s4361_s27  ;;  %v1003_v44 = vpack.c.b16 %v1001_v40, %v1000_v35 }
 0x579   : > { %1015 = vmatpush.bf16.msra.mxu0 %v1003_v44 }
 0x57c   : > { %1171 = vmatpush.bf16.xpose.msrb.mxu3 %v1159_v16 }
 0x57d   : > { %1016 = vmatpush.bf16.msra.mxu0 %v1002_v46 }
 0x57f   : > { %1087 = vrot.lane.b32.xlu2 %v1024_v6, %s4360_s26 }
 0x587   : > { %1149 = vrot.lane.b32.xlu2 %v1024_v6, %s4362_s17 }
 0x5d1   : > { %v1026_v18 = vpop.permute.xlu2 %1025 }
 0x5d2   : > { %3289 = vmatmul.msk.bf16.vlgmr.msra.gmra.mxu3 %vm506_vm2, %v1026_v18 }
 0x5d9   : > { %v1088_v19 = vpop.permute.xlu2 %1087 }
 0x5da   : > { %3291 = vmatmul.msk.bf16.vlgmr.msra.gmra.mxu1 %vm506_vm2, %v1088_v19 }
 0x5e1   : > { %v1150_v20 = vpop.permute.xlu2 %1149 }
 0x5e2   : > { %3293 = vmatmul.msk.bf16.vlgmr.msrb.gmra.mxu3 %vm506_vm2, %v1150_v20 }
 0x5f6   : > { %v978_v21 = vpop.f32.mrf.mxu3 }
 0x5f7   : > { %v982_v22 = vsel %vm434_vm1, %v978_v21, -inf }
 0x5f8   : > { %983 = vmax.xlane.f32.xlu2 %v982_v22 }
 0x5fe   : > { %v980_v23 = vpop.f32.mrf.mxu3 }
 0x655   : > { %v1049_v32 = vpop.f32.mrf.mxu3 }
 0x656   : > { %v1053_v38 = vsel %vm434_vm1, %v1049_v32, -inf }
 0x657   : > { %1054 = vmax.xlane.f32.xlu0 %v1053_v38  ;;  %v1111_v39 = vpop.f32.mrf.mxu1 }
 0x658   : > { %v1115_v41 = vsel %vm434_vm1, %v1111_v39, -inf }
 0x659   : > { %1116 = vmax.xlane.f32.xlu1 %v1115_v41  ;;  %v3984_v41 = vld [vmem:[%s4491_s11 + $0x78] sm:$0xff] }
 0x65a   : > { %1249 = vmatpush.bf16.msrb.mxu1 %v3984_v41  ;;  %v3995_v41 = vld [vmem:[%s4496_s18 + $0x4c] sm:$0xf0] }
 0x65d   : > { %v1051_v45 = vpop.f32.mrf.mxu3 }
 0x65e   : > { %1250 = vmatpush.bf16.msrb.mxu1 %v3983_v42 }
 0x65f   : > { %v1113_v47 = vpop.f32.mrf.mxu1 }
 0x665   : > { %v1173_v48 = vpop.f32.mrf.mxu3 }
 0x666   : > { %v1177_v49 = vsel %vm434_vm1, %v1173_v48, -inf }
 0x667   : > { %1178 = vmax.xlane.f32.xlu2 %v1177_v49 }
 0x66b   : > { %v984_v50 = vpop.xlane.xlu2 %983 }
 0x66c   : > { %v985_v52 = vsub.f32 %v978_v21, %v984_v50  ;;  %v1227_v50 = vperm.slane %v4532_v7, 7  ;;  %v3370_v7 = vld [vmem:[%s4496_s18 + $0x80] sm:$0xf] }
 0x66d   : > { %v1175_v53 = vpop.f32.mrf.mxu3 }
 0x66e   : > { %v986_v54 = vmul.f32 1.442695, %v985_v52 }
 0x670   : > { %4243 = vpow2.f32 %v986_v54 }
 0x672   : > { %1129 = vrot.lane.b32.xlu1 %v1003_v44, %s4360_s26 }
 0x676   : > { %v4244_v56 = vpop.eup %4243 }
 0x677   : > { %v988_v57 = vsel %vm434_vm1, %v4244_v56, 0.0 }
 0x678   : > { %989 = vadd.xlane.f32.xlu0 %v988_v57 }
 0x67f   : > { %1067 = vrot.lane.b32.xlu2 %v1003_v44, %s4361_s27 }
 0x687   : > { %1127 = vrot.lane.b32.xlu2 %v1002_v46, %s4360_s26 }
 0x68c   : > { %1065 = vrot.lane.b32.xlu0 %v1002_v46, %s4361_s27 }
 0x68f   : > { %1191 = vrot.lane.b32.xlu2 %v1003_v44, %s4362_s17 }
 0x6ca   : > { %v1055_v58 = vpop.xlane.xlu0 %1054 }
 0x6cb   : > { %v1056_v62 = vsub.f32 %v1049_v32, %v1055_v58 }
 0x6cc   : > { %v1117_v60 = vpop.xlane.xlu1 %1116 }
 0x6cd   : > { %v1118_v61 = vsub.f32 %v1111_v39, %v1117_v60  ;;  %v1057_v0 = vmul.f32 1.442695, %v1056_v62  ;;  %v4001_v62 = vld [vmem:[%s4496_s18 + $0x84] sm:$0xf] }
 0x6cf   : > { %v1119_v63 = vmul.f32 1.442695, %v1118_v61  ;;  %v4009_v61 = vld [vmem:[%s4496_s18 + $0xbc] sm:$0xf0] }
 0x6d1   : > { %4245 = vpow2.f32 %v1119_v63  ;;  %v3372_v63 = vld [vmem:[%s4496_s18 + $0xc0] sm:$0xf0] }
 0x6d2   : > { %4247 = vpow2.f32 %v1057_v0  ;;  %v3378_v0 = vld [vmem:[%s4496_s18 + $0x88] sm:$0xf] }
 0x6d7   : > { %v4246_v1 = vpop.eup %4245 }
 0x6d8   : > { %v1121_v2 = vsel %vm434_vm1, %v4246_v1, 0.0  ;;  %v4248_v6 = vpop.eup %4247 }
 0x6d9   : > { %1122 = vadd.xlane.f32.xlu1 %v1121_v2  ;;  %v1059_v9 = vsel %vm434_vm1, %v4248_v6, 0.0  ;;  %v3375_v2 = vor.u32 %v4001_v62, %v3372_v63  ;;  %v1282_v62 = vperm.slane %v4610_v36, 3  ;;  %v1284_v63 = vperm.slane %v4610_v36, 4 }
 0x6da   : > { %v1179_v3 = vpop.xlane.xlu2 %1178 }
 0x6db   : > { %v1180_v4 = vsub.f32 %v1173_v48, %v1179_v3  ;;  %1537 = vmatpush.bf16.msra.mxu3 %v3375_v2  ;;  %v3402_v2 = vld [vmem:[%s4496_s18 + $0xa0] sm:$0xf] }
 0x6dd   : > { %v1181_v8 = vmul.f32 1.442695, %v1180_v4  ;;  %v4002_v4 = vld [vmem:[%s4496_s18 + $0x8c] sm:$0xf] }
 0x6df   : > { %4249 = vpow2.f32 %v1181_v8 }
 0x6e1   : > { %1060 = vadd.xlane.f32.xlu1 %v1059_v9 }
 0x6e2   : > { %v1068_v10 = vpop.permute.xlu2 %1067 }
 0x6e3   : > { %1080 = vmatpush.bf16.msrb.mxu0 %v1068_v10  ;;  %v3306_v10 = vld [vmem:[%s4496_s18] sm:$0xf] }
 0x6e4   : > { %v1130_v11 = vpop.permute.xlu1 %1129 }
 0x6e5   : > { %v4250_v5 = vpop.eup %4249  ;;  %1142 = vmatpush.bf16.msra.mxu2 %v1130_v11  ;;  %v3993_v11 = vld [vmem:[%s4496_s18 + $0x3c] sm:$0xf0] }
 0x6e6   : > { %v1183_v13 = vsel %vm434_vm1, %v4250_v5, 0.0 }
 0x6e7   : > { %1184 = vadd.xlane.f32.xlu0 %v1183_v13 }
 0x6ea   : > { %v1128_v14 = vpop.permute.xlu2 %1127 }
 0x6eb   : > { %v990_v15 = vpop.xlane.xlu0 %989  ;;  %1143 = vmatpush.bf16.msra.mxu2 %v1128_v14  ;;  %v3307_v14 = vor.u32 %v3993_v11, %v3306_v10  ;;  %v4006_v10 = vld [vmem:[%s4496_s18 + $0xac] sm:$0xf] }
 0x6ec   : > { %4251 = vrcp.f32 %v990_v15  ;;  %v3308_v15 = vld [vmem:[%s4496_s18 + $0x40] sm:$0xf0]  ;;  %v3412_v11 = vld [vmem:[%s4496_s18 + $0xe8] sm:$0xf0] }
 0x6f2   : > { %v4252_v16 = vpop.eup %4251  ;;  %v1192_v19 = vpop.permute.xlu2 %1191 }
 0x6f3   : > { %v992_v17 = vmul.f32 %v4252_v16, %v4244_v56  ;;  %v3314_v16 = vld [vmem:[%s4496_s18 + $0x8] sm:$0xf] }
 0x6f5   : > { %v993_v18 = vpack.c.bf16 %v992_v17, %v992_v17  ;;  %v3994_v17 = vld [vmem:[%s4496_s18 + $0x44] sm:$0xf0] }
 0x6f7   : > { %3288 = vmatmul.msk.bf16.vlgmr.msra.gmra.mxu0 %vm434_vm1, %v993_v18 }
 0x6fa   : > { %1189 = vrot.lane.b32.xlu1 %v1002_v46, %s4362_s17 }
 0x6fe   : > { %v1066_v20 = vpop.permute.xlu0 %1065 }
 0x6ff   : > { %1081 = vmatpush.bf16.msrb.mxu0 %v1066_v20  ;;  %v3315_v20 = vor.u32 %v3994_v17, %v3314_v16  ;;  %v3415_v17 = vor.u32 %v4006_v10, %v3412_v11  ;;  %v4028_v10 = vld [vmem:[%s4501_s24 + $0x58] sm:$0xff]  ;;  %v4035_v11 = vld [vmem:[%s4501_s24 + $0x90] sm:$0xff] }
 0x703   : > { %1204 = vmatpush.bf16.msra.mxu0 %v1192_v19 }
 0x74c   : > { %v1123_v21 = vpop.xlane.xlu1 %1122 }
 0x74d   : > { %4253 = vrcp.f32 %v1123_v21  ;;  %v3986_v21 = vld [vmem:[%s4496_s18 + $0xc] sm:$0xf] }
 0x753   : > { %v4254_v22 = vpop.eup %4253 }
 0x754   : > { %v1125_v23 = vmul.f32 %v4254_v22, %v4246_v1  ;;  %v1061_v24 = vpop.xlane.xlu1 %1060  ;;  %v4010_v1 = vld [vmem:[%s4496_s18 + $0xc4] sm:$0xf0]  ;;  %v3316_v22 = vld [vmem:[%s4496_s18 + $0x48] sm:$0xf0] }
 0x755   : > { %4255 = vrcp.f32 %v1061_v24  ;;  %v3379_v3 = vor.u32 %v4010_v1, %v3378_v0 }
 0x756   : > { %v1126_v25 = vpack.c.bf16 %v1125_v23, %v1125_v23 }
 0x758   : > { %3292 = vmatmul.msk.bf16.vlgmr.msra.gmra.mxu2 %vm434_vm1, %v1126_v25  ;;  %v3319_v25 = vor.u32 %v3986_v21, %v3316_v22  ;;  %v3998_v21 = vld [vmem:[%s4496_s18 + $0x64] sm:$0xf0]  ;;  %v3990_v22 = vld [vmem:[%s4496_s18 + $0x2c] sm:$0xf] }
 0x75a   : > { %v1185_v27 = vpop.xlane.xlu0 %1184 }
 0x75b   : > { %v4256_v55 = vpop.eup %4255  ;;  %4257 = vrcp.f32 %v1185_v27  ;;  %v4003_v27 = vld [vmem:[%s4496_s18 + $0x94] sm:$0xf] }
 0x75c   : > { %v1063_v26 = vmul.f32 %v4256_v55, %v4248_v6  ;;  %v3380_v6 = vld [vmem:[%s4496_s18 + $0xc8] sm:$0xf0] }
 0x75d   : > { %v3383_v8 = vor.u32 %v4002_v4, %v3380_v6  ;;  %v4005_v4 = vld [vmem:[%s4496_s18 + $0xa4] sm:$0xf] }
 0x75e   : > { %v1064_v59 = vpack.c.bf16 %v1063_v26, %v1063_v26  ;;  %v3386_v26 = vld [vmem:[%s4496_s18 + $0x90] sm:$0xf]  ;;  %v3404_v6 = vld [vmem:[%s4496_s18 + $0xe0] sm:$0xf0] }
 0x75f   : > { %1563 = vmatpush.bf16.msra.mxu1 %v3383_v8  ;;  %v3410_v8 = vld [vmem:[%s4496_s18 + $0xa8] sm:$0xf] }
 0x760   : > { %3290 = vmatmul.msk.bf16.vlgmr.msrb.gmra.mxu0 %vm434_vm1, %v1064_v59  ;;  %v4011_v59 = vld [vmem:[%s4496_s18 + $0xcc] sm:$0xf0] }
 0x761   : > { %v4258_v28 = vpop.eup %4257 }
 0x762   : > { %v1187_v29 = vmul.f32 %v4258_v28, %v4250_v5  ;;  %v3985_v5 = vld [vmem:[%s4496_s18 + $0x4] sm:$0xf] }
 0x763   : > { %v3311_v19 = vor.u32 %v3985_v5, %v3308_v15  ;;  %1564 = vmatpush.bf16.msra.mxu1 %v3319_v25  ;;  %v3997_v15 = vld [vmem:[%s4496_s18 + $0x5c] sm:$0xf0] }
 0x764   : > { %v1188_v31 = vpack.c.bf16 %v1187_v29, %v1187_v29  ;;  %v3387_v29 = vor.u32 %v4011_v59, %v3386_v26  ;;  %v3418_v59 = vld [vmem:[%s4496_s18 + $0xb0] sm:$0xf] }
 0x765   : > { %1538 = vmatpush.bf16.msra.mxu3 %v3311_v19  ;;  %v3340_v19 = vld [vmem:[%s4496_s18 + $0x60] sm:$0xf0] }
 0x76c   : > { %v1190_v30 = vpop.permute.xlu1 %1189 }
 0x76d   : > { %1205 = vmatpush.bf16.msra.mxu0 %v1190_v30  ;;  %v3388_v30 = vld [vmem:[%s4496_s18 + $0xd0] sm:$0xf0] }
 0x770   : > { %3294 = vmatmul.msk.bf16.vlgmr.msra.gmra.mxu0 %vm434_vm1, %v1188_v31  ;;  %v3394_v31 = vld [vmem:[%s4496_s18 + $0x98] sm:$0xf] }
 0x771   : > { %1550 = vmatpush.bf16.msrb.mxu0 %v3379_v3  ;;  %v4013_v3 = vld [vmem:[%s4496_s18 + $0xdc] sm:$0xf0] }
 0x772   : > { %v3403_v5 = vor.u32 %v4013_v3, %v3402_v2  ;;  %v4045_v2 = vld [vmem:[%s4501_s24 + $0xe0] sm:$0xff] }
 0x773   : > { %v4021_v3 = vld [vmem:[%s4501_s24 + $0x20] sm:$0xff] }
 0x774   : > { %v1018_v32 = vpop.f32.mrf.mxu0 }
 0x775   : > { %1551 = vmatpush.bf16.msrb.mxu0 %v3315_v20  ;;  %v3346_v20 = vld [vmem:[%s4496_s18 + $0x28] sm:$0xf] }
 0x77c   : > { %v1020_v33 = vpop.f32.mrf.mxu0 }
 0x77d   : > { %v4012_v33 = vld [vmem:[%s4496_s18 + $0xd4] sm:$0xf0] }
 0x7db   : > { %v1145_v34 = vpop.f32.mrf.mxu2 }
 0x7dc   : > { %1216 = vrot.lane.b32.xlu1 %v1145_v34, %s4365_s20  ;;  %v4004_v34 = vld [vmem:[%s4496_s18 + $0x9c] sm:$0xf] }
 0x7dd   : > { %v1083_v35 = vpop.f32.mrf.mxu0 }
 0x7de   : > { %1212 = vrot.lane.b32.xlu2 %v1083_v35, %s4363_s19  ;;  %v3396_v35 = vld [vmem:[%s4496_s18 + $0xd8] sm:$0xf0] }
 0x7e3   : > { %v1147_v37 = vpop.f32.mrf.mxu2 }
 0x7e5   : > { %v1085_v38 = vpop.f32.mrf.mxu0 }
 0x7e6   : > { %v3395_v38 = vor.u32 %v4012_v33, %v3394_v31  ;;  %v4016_v31 = vld [vmem:[%s4496_s18 + $0xf4] sm:$0xf0]  ;;  %v3428_v33 = vld [vmem:[%s4496_s18 + $0xf8] sm:$0xf0] }
 0x7e8   : > { %1602 = vmatpush.bf16.msra.mxu0 %v3395_v38  ;;  %v3999_v38 = vld [vmem:[%s4496_s18 + $0x6c] sm:$0xf0] }
 0x7ed   : > { %v1207_v39 = vpop.f32.mrf.mxu0 }
 0x7ee   : > { %1220 = vrot.lane.b32.xlu2 %v1207_v39, %s4364_s21  ;;  %v3399_v39 = vor.u32 %v4004_v34, %v3396_v35 }
 0x7f5   : > { %v1209_v40 = vpop.f32.mrf.mxu0 }
 0x7f6   : > { %v3322_v40 = vld [vmem:[%s4496_s18 + $0x10] sm:$0xf] }
 0x7f7   : > { %v3323_v42 = vor.u32 %v3995_v41, %v3322_v40  ;;  %v3991_v41 = vld [vmem:[%s4496_s18 + $0x34] sm:$0xf] }
 0x838   : > { %v1213_v43 = vpop.permute.xlu2 %1212 }
 0x839   : > { %v1223_v44 = vsel %vm506_vm2, %v1018_v32, %v1213_v43  ;;  %v3391_v32 = vor.u32 %v4003_v27, %v3388_v30  ;;  %v3987_v43 = vld [vmem:[%s4496_s18 + $0x14] sm:$0xf]  ;;  %v4015_v27 = vld [vmem:[%s4496_s18 + $0xec] sm:$0xf0]  ;;  %v3426_v30 = vld [vmem:[%s4496_s18 + $0xb8] sm:$0xf] }
 0x83a   : > { %v3419_v34 = vor.u32 %v4015_v27, %v3418_v59  ;;  %v4055_v59 = vld [vmem:[%s4501_s24 + $0x130] sm:$0xff] }
 0x83b   : > { %1589 = vmatpush.bf16.msrb.mxu3 %v3391_v32  ;;  %v4008_v32 = vld [vmem:[%s4496_s18 + $0xbc] sm:$0xf]  ;;  %v4063_v27 = vld [vmem:[%s4501_s24 + $0x170] sm:$0xff] }
 0x83c   : > { %v3431_v40 = vor.u32 %v4008_v32, %v3428_v33  ;;  %v4069_v32 = vld [vmem:[%s4501_s24 + $0x1a0] sm:$0xff] }
 0x83d   : > { %v4077_v33 = vld [vmem:[%s4501_s24 + $0x1e0] sm:$0xff] }
 0x848   : > { %v1221_v46 = vpop.permute.xlu2 %1220 }
 0x84e   : > { %v1217_v45 = vpop.permute.xlu1 %1216 }
 0x84f   : > { %v1224_v47 = vsel %vm748_vm4, %v1223_v44, %v1217_v45  ;;  %v3324_v44 = vld [vmem:[%s4496_s18 + $0x50] sm:$0xf0]  ;;  %v3330_v45 = vld [vmem:[%s4496_s18 + $0x18] sm:$0xf] }
 0x850   : > { %v1225_v48 = vsel %vm750_vm5, %v1224_v47, %v1221_v46  ;;  %v3327_v46 = vor.u32 %v3987_v43, %v3324_v44  ;;  %v3996_v47 = vld [vmem:[%s4496_s18 + $0x54] sm:$0xf0] }
 0x851   : > { %v1226_v49 = vpack.c.bf16 %v1225_v48, %v1225_v48  ;;  %v3988_v48 = vld [vmem:[%s4496_s18 + $0x1c] sm:$0xf]  ;;  %v3362_v43 = vld [vmem:[%s4496_s18 + $0x38] sm:$0xf] }
 0x852   : > { %1590 = vmatpush.bf16.msrb.mxu3 %v3327_v46  ;;  %v4000_v44 = vld [vmem:[%s4496_s18 + $0x74] sm:$0xf0]  ;;  %v3364_v46 = vld [vmem:[%s4496_s18 + $0x78] sm:$0xf0] }
 0x853   : > { %3303 = vmatmul.msk.bf16.vlgmr.msrb.gmra.mxu1 %vm434_vm1, %v1226_v49  ;;  %v3332_v49 = vld [vmem:[%s4496_s18 + $0x58] sm:$0xf0] }
 0x854   : > { %1615 = vmatpush.bf16.msrb.mxu1 %v3399_v39  ;;  %v3427_v39 = vor.u32 %v4016_v31, %v3426_v30  ;;  %v4054_v30 = vld [vmem:[%s4501_s24 + $0x128] sm:$0xff] }
 0x855   : > { %v4062_v31 = vld [vmem:[%s4501_s24 + $0x168] sm:$0xff] }
 0x8d0   : > { %v1252_v52 = vpop.f32.mrf.mxu1 }
 0x8d1   : > { %v1253_v53 = vadd.f32 %v1252_v52, %v1227_v50  ;;  %v3331_v50 = vor.u32 %v3996_v47, %v3330_v45  ;;  %v3335_v52 = vor.u32 %v3988_v48, %v3332_v49  ;;  %v3992_v45 = vld [vmem:[%s4496_s18 + $0x3c] sm:$0xf]  ;;  %v3363_v49 = vor.u32 %v4000_v44, %v3362_v43  ;;  %v4066_v43 = vld [vmem:[%s4501_s24 + $0x188] sm:$0xff] }
 0x8d2   : > { %v4074_v44 = vld [vmem:[%s4501_s24 + $0x1c8] sm:$0xff] }
 0x8d3   : > { %v4675_v54 = vadd.f32 %v1253_v53, %v4614_v51  ;;  %v3371_v51 = vor.u32 %v4009_v61, %v3370_v7  ;;  %1603 = vmatpush.bf16.msra.mxu0 %v3331_v50  ;;  %1616 = vmatpush.bf16.msrb.mxu1 %v3335_v52  ;;  %v3367_v50 = vor.u32 %v3992_v45, %v3364_v46  ;;  %v4040_v52 = vld [vmem:[%s4501_s24 + $0xb8] sm:$0xff]  ;;  %v4051_v45 = vld [vmem:[%s4501_s24 + $0x110] sm:$0xff] }
 0x8d4   : > { %v4059_v46 = vld [vmem:[%s4501_s24 + $0x150] sm:$0xff] }
 0x8d5   : > { %v1257_v56 = vsel %vm434_vm1, %v4675_v54, 0.0  ;;  %v1261_v57 = vmul.f32 %v4675_v54, %v4675_v54  ;;  %1524 = vmatpush.bf16.msrb.mxu2 %v3371_v51 }
 0x8d6   : > { %1258 = vadd.xlane.f32.xlu1 %v1257_v56 }
 0x8d7   : > { %v1262_v58 = vsel %vm434_vm1, %v1261_v57, 0.0 }
 0x8d8   : > { %v1254_v60 = vpop.f32.mrf.mxu1  ;;  %1263 = vadd.xlane.f32.xlu2 %v1262_v58 }
 0x8d9   : > { %1525 = vmatpush.bf16.msrb.mxu2 %v3307_v14  ;;  %v3338_v14 = vld [vmem:[%s4496_s18 + $0x20] sm:$0xf] }
 0x8dd   : > { %1576 = vmatpush.bf16.msra.mxu2 %v3387_v29  ;;  %v3420_v29 = vld [vmem:[%s4496_s18 + $0xf0] sm:$0xf0] }
 0x8e1   : > { %1577 = vmatpush.bf16.msra.mxu2 %v3323_v42  ;;  %v3356_v42 = vld [vmem:[%s4496_s18 + $0x70] sm:$0xf0] }
 0x8e2   : > { %v3359_v48 = vor.u32 %v3991_v41, %v3356_v42  ;;  %v4052_v41 = vld [vmem:[%s4501_s24 + $0x118] sm:$0xff] }
 0x8e3   : > { %v4060_v42 = vld [vmem:[%s4501_s24 + $0x158] sm:$0xff] }
 0x949   : > { %v1259_v9 = vpop.xlane.xlu1 %1258 }
 0x94a   : > { %v4694_v13 = vmul.f32 %v1259_v9, %v4601_v12 }
 0x94b   : > { %v1264_v18 = vpop.xlane.xlu2 %1263 }
 0x94c   : > { %v1266_v23 = vmul.f32 %v4694_v13, %v4694_v13  ;;  %v1265_v24 = vmul.f32 %v1264_v18, %v4601_v12  ;;  %v1269_v61 = vsub.f32 %v4675_v54, %v4694_v13  ;;  %v4014_v54 = vld [vmem:[%s4496_s18 + $0xe4] sm:$0xf0]  ;;  %v3407_v13 = vor.u32 %v4005_v4, %v3404_v6  ;;  %v3989_v18 = vld [vmem:[%s4496_s18 + $0x24] sm:$0xf]  ;;  %v4036_v6 = vld [vmem:[%s4501_s24 + $0x98] sm:$0xff] }
 0x94d   : > { %v3411_v16 = vor.u32 %v4014_v54, %v3410_v8  ;;  %v3343_v25 = vor.u32 %v3989_v18, %v3340_v19  ;;  %v4029_v4 = vld [vmem:[%s4501_s24 + $0x60] sm:$0xff]  ;;  %v4044_v8 = vld [vmem:[%s4501_s24 + $0xd8] sm:$0xff] }
 0x94e   : > { %v1267_v55 = vsub.f32 %v1265_v24, %v1266_v23  ;;  %v3348_v23 = vld [vmem:[%s4496_s18 + $0x68] sm:$0xf0]  ;;  %v3339_v24 = vor.u32 %v3997_v15, %v3338_v14  ;;  %v4020_v54 = vld [vmem:[%s4501_s24 + $0x18] sm:$0xff]  ;;  %v4027_v14 = vld [vmem:[%s4501_s24 + $0x50] sm:$0xff] }
 0x94f   : > { %v3351_v26 = vor.u32 %v3990_v22, %v3348_v23  ;;  %v4034_v15 = vld [vmem:[%s4501_s24 + $0x88] sm:$0xff]  ;;  %v4033_v18 = vld [vmem:[%s4501_s24 + $0x80] sm:$0xff] }
 0x950   : > { %v1268_v28 = vmax.f32 %v1267_v55, 0.0  ;;  %v3347_v55 = vor.u32 %v3998_v21, %v3346_v20  ;;  %v4041_v19 = vld [vmem:[%s4501_s24 + $0xc0] sm:$0xff]  ;;  %v4072_v20 = vld [vmem:[%s4501_s24 + $0x1b8] sm:$0xff] }
 0x951   : > { %v4080_v21 = vld [vmem:[%s4501_s24 + $0x1f8] sm:$0xff]  ;;  %v4017_v22 = vld [vmem:[%s4501_s24] sm:$0xff] }
 0x952   : > { %v1270_v37 = vadd.f32 1e-05, %v1268_v28  ;;  %v4007_v28 = vld [vmem:[%s4496_s18 + $0xb4] sm:$0xf]  ;;  %v4025_v23 = vld [vmem:[%s4501_s24 + $0x40] sm:$0xff] }
 0x953   : > { %v3423_v35 = vor.u32 %v4007_v28, %v3420_v29  ;;  %v4070_v28 = vld [vmem:[%s4501_s24 + $0x1a8] sm:$0xff] }
 0x954   : > { %4259 = vrsqrt.f32 %v1270_v37  ;;  %vm1277_vm11 = vweird.f32 %v1270_v37  ;;  %v4078_v29 = vld [vmem:[%s4501_s24 + $0x1e8] sm:$0xff] }
 0x95a   : > { %v4260_v53 = vpop.eup %4259 }
 0x95b   : > { %v1272_v56 = vmul.f32 %v4260_v53, %v1270_v37  ;;  %vm1278_vm10 = vweird.f32 %v4260_v53  ;;  %v3354_v37 = vld [vmem:[%s4496_s18 + $0x30] sm:$0xf] }
 0x95c   : > { %vm1279_vm12 = vmor %vm1277_vm11, %vm1278_vm10  ;;  %v3355_v47 = vor.u32 %v3999_v38, %v3354_v37  ;;  %v4068_v37 = vld [vmem:[%s4501_s24 + $0x198] sm:$0xff] }
 0x95d   : > { %v1273_v57 = vmul.f32 %v4260_v53, %v1272_v56  ;;  %v4024_v56 = vld [vmem:[%s4501_s24 + $0x38] sm:$0xff] }
 0x95e   : > { %v4076_v38 = vld [vmem:[%s4501_s24 + $0x1d8] sm:$0xff] }
 0x95f   : > { %v1274_v58 = vmul.f32 0.5, %v1273_v57  ;;  %v4032_v57 = vld [vmem:[%s4501_s24 + $0x78] sm:$0xff] }
 0x961   : > { %v1275_v60 = vsub.f32 1.5, %v1274_v58  ;;  %v4039_v58 = vld [vmem:[%s4501_s24 + $0xb0] sm:$0xff] }
 0x963   : > { %v1276_v7 = vmul.f32 %v4260_v53, %v1275_v60  ;;  %v4047_v60 = vld [vmem:[%s4501_s24 + $0xf0] sm:$0xff] }
 0x965   : > { %v1280_v51 = vsel %vm1279_vm12, %v4260_v53, %v1276_v7  ;;  %v4048_v53 = vld [vmem:[%s4501_s24 + $0xf8] sm:$0xff]  ;;  %v4023_v7 = vld [vmem:[%s4501_s24 + $0x30] sm:$0xff] }
 0x966   : > { %v1281_v0 = vmul.f32 %v1280_v51, %v1269_v61  ;;  %v4031_v61 = vld [vmem:[%s4501_s24 + $0x70] sm:$0xff]  ;;  %v4046_v51 = vld [vmem:[%s4501_s24 + $0xe8] sm:$0xff] }
 0x968   : > { %v1283_v1 = vmul.f32 %v1282_v62, %v1281_v0  ;;  %v4038_v62 = vld [vmem:[%s4501_s24 + $0xa8] sm:$0xff] }
 0x969   : > { %v4030_v0 = vld [vmem:[%s4501_s24 + $0x68] sm:$0xff] }
 0x96a   : > { %v4729_v9 = vadd.f32 %v1284_v63, %v1283_v1  ;;  %v4022_v63 = vld [vmem:[%s4501_s24 + $0x28] sm:$0xff]  ;;  %v4037_v1 = vld [vmem:[%s4501_s24 + $0xa0] sm:$0xff] }
 0x96c   : > { %v4736_v36 = vpack.c.bf16 %v4729_v9, %v4729_v9 }
 0x96e   : > { %3432 = vmatmul.msk.bf16.vlgmr.msrb.gmra.mxu2 %vm434_vm1, %v4736_v36  ;;  %3433 = vmatmul.msk.bf16.vlgmr.msra.gmra.mxu3 %vm434_vm1, %v4736_v36 }
 0x96f   : > { %3434 = vmatmul.msk.bf16.vlgmr.msrb.gmra.mxu0 %vm434_vm1, %v4736_v36  ;;  %3435 = vmatmul.msk.bf16.vlgmr.msra.gmra.mxu1 %vm434_vm1, %v4736_v36 }
 0x970   : > { %1628 = vmatpush.bf16.msrb.mxu2 %v3403_v5  ;;  %1641 = vmatpush.bf16.msra.mxu3 %v3407_v13  ;;  %v4043_v5 = vld [vmem:[%s4501_s24 + $0xd0] sm:$0xff] }
 0x971   : > { %1654 = vmatpush.bf16.msrb.mxu0 %v3411_v16  ;;  %1667 = vmatpush.bf16.msra.mxu1 %v3415_v17  ;;  %v4019_v13 = vld [vmem:[%s4501_s24 + $0x10] sm:$0xff]  ;;  %v4018_v16 = vld [vmem:[%s4501_s24 + $0x8] sm:$0xff] }
 0x972   : > { %v4026_v17 = vld [vmem:[%s4501_s24 + $0x48] sm:$0xff] }
 0x974   : > { %1629 = vmatpush.bf16.msrb.mxu2 %v3339_v24  ;;  %1642 = vmatpush.bf16.msra.mxu3 %v3343_v25  ;;  %v4056_v24 = vld [vmem:[%s4501_s24 + $0x138] sm:$0xff] }
 0x975   : > { %1655 = vmatpush.bf16.msrb.mxu0 %v3347_v55  ;;  %1668 = vmatpush.bf16.msra.mxu1 %v3351_v26  ;;  %v4064_v25 = vld [vmem:[%s4501_s24 + $0x178] sm:$0xff]  ;;  %v4071_v55 = vld [vmem:[%s4501_s24 + $0x1b0] sm:$0xff] }
 0x976   : > { %v4079_v26 = vld [vmem:[%s4501_s24 + $0x1f0] sm:$0xff] }
 0x97e   : > { %3436 = vmatmul.msk.bf16.vlgmr.msra.gmra.mxu2 %vm434_vm1, %v4736_v36  ;;  %3437 = vmatmul.msk.bf16.vlgmr.msrb.gmra.mxu3 %vm434_vm1, %v4736_v36 }
 0x97f   : > { %3438 = vmatmul.msk.bf16.vlgmr.msra.gmra.mxu0 %vm434_vm1, %v4736_v36  ;;  %3439 = vmatmul.msk.bf16.vlgmr.msrb.gmra.mxu1 %vm434_vm1, %v4736_v36 }
 0x980   : > { %1680 = vmatpush.bf16.msra.mxu2 %v3419_v34  ;;  %1693 = vmatpush.bf16.msrb.mxu3 %v3423_v35  ;;  %v4053_v34 = vld [vmem:[%s4501_s24 + $0x120] sm:$0xff] }
 0x981   : > { %1706 = vmatpush.bf16.msra.mxu0 %v3427_v39  ;;  %1719 = vmatpush.bf16.msrb.mxu1 %v3431_v40  ;;  %v4061_v35 = vld [vmem:[%s4501_s24 + $0x160] sm:$0xff]  ;;  %v4067_v39 = vld [vmem:[%s4501_s24 + $0x190] sm:$0xff] }
 0x982   : > { %v4075_v40 = vld [vmem:[%s4501_s24 + $0x1d0] sm:$0xff] }
 0x984   : > { %1681 = vmatpush.bf16.msra.mxu2 %v3355_v47  ;;  %1694 = vmatpush.bf16.msrb.mxu3 %v3359_v48  ;;  %v4065_v47 = vld [vmem:[%s4501_s24 + $0x180] sm:$0xff] }
 0x985   : > { %1707 = vmatpush.bf16.msra.mxu0 %v3363_v49  ;;  %1720 = vmatpush.bf16.msrb.mxu1 %v3367_v50  ;;  %v4073_v48 = vld [vmem:[%s4501_s24 + $0x1c0] sm:$0xff]  ;;  %v4050_v49 = vld [vmem:[%s4501_s24 + $0x108] sm:$0xff] }
 0x986   : > { %v4058_v50 = vld [vmem:[%s4501_s24 + $0x148] sm:$0xff] }
 0x98e   : > { %3440 = vmatmul.msk.bf16.vlgmr.msrb.gmra.mxu2 %vm434_vm1, %v4736_v36  ;;  %3441 = vmatmul.msk.bf16.vlgmr.msra.gmra.mxu3 %vm434_vm1, %v4736_v36 }
 0x98f   : > { %3442 = vmatmul.msk.bf16.vlgmr.msrb.gmra.mxu0 %vm434_vm1, %v4736_v36  ;;  %3443 = vmatmul.msk.bf16.vlgmr.msra.gmra.mxu1 %vm434_vm1, %v4736_v36 }
 0x990   : > { %2809 = vmatpush.bf16.msrb.mxu0 %v4040_v52  ;;  %2822 = vmatpush.bf16.msra.mxu1 %v4048_v53  ;;  %v4049_v52 = vld [vmem:[%s4501_s24 + $0x100] sm:$0xff] }
 0x991   : > { %2783 = vmatpush.bf16.msrb.mxu2 %v4024_v56  ;;  %2796 = vmatpush.bf16.msra.mxu3 %v4032_v57  ;;  %v4057_v53 = vld [vmem:[%s4501_s24 + $0x140] sm:$0xff] }
 0x992   : > { %v4859_v56 = vld [vmem:[%s4506_s1] sm:$0xff] }
 0x993   : > { %v1325_v57 = vperm.slane %v4859_v56, 2 }
 0x994   : > { %2810 = vmatpush.bf16.msrb.mxu0 %v4039_v58  ;;  %2823 = vmatpush.bf16.msra.mxu1 %v4047_v60  ;;  %v1326_v58 = vperm.slane %v4859_v56, 3 }
 0x995   : > { %2784 = vmatpush.bf16.msrb.mxu2 %v4023_v7  ;;  %2797 = vmatpush.bf16.msra.mxu3 %v4031_v61 }
 0x998   : > { %2811 = vmatpush.bf16.msrb.mxu0 %v4038_v62  ;;  %2824 = vmatpush.bf16.msra.mxu1 %v4046_v51  ;;  %v1323_v51 = vperm.slane %v4859_v56, 0 }
 0x999   : > { %2785 = vmatpush.bf16.msrb.mxu2 %v4022_v63  ;;  %2798 = vmatpush.bf16.msra.mxu3 %v4030_v0  ;;  %v1324_v63 = vperm.slane %v4859_v56, 1 }
 0x99c   : > { %2812 = vmatpush.bf16.msrb.mxu0 %v4037_v1  ;;  %2825 = vmatpush.bf16.msra.mxu1 %v4045_v2  ;;  %v4104_v2 = vld [vmem:[%s4501_s24 + $0x2b8] sm:$0xff] }
 0x99d   : > { %2786 = vmatpush.bf16.msrb.mxu2 %v4021_v3  ;;  %2799 = vmatpush.bf16.msra.mxu3 %v4029_v4  ;;  %v4112_v3 = vld [vmem:[%s4501_s24 + $0x2f8] sm:$0xff] }
 0x99e   : > { %3444 = vmatmul.msk.bf16.vlgmr.msra.gmra.mxu2 %vm434_vm1, %v4736_v36  ;;  %3445 = vmatmul.msk.bf16.vlgmr.msrb.gmra.mxu3 %vm434_vm1, %v4736_v36 }
 0x99f   : > { %3446 = vmatmul.msk.bf16.vlgmr.msra.gmra.mxu0 %vm434_vm1, %v4736_v36  ;;  %3447 = vmatmul.msk.bf16.vlgmr.msrb.gmra.mxu1 %vm434_vm1, %v4736_v36  ;;  %v4042_v36 = vld [vmem:[%s4501_s24 + $0xc8] sm:$0xff] }
 0x9a0   : > { %2813 = vmatpush.bf16.msrb.mxu0 %v4036_v6  ;;  %2826 = vmatpush.bf16.msra.mxu1 %v4044_v8 }
 0x9a1   : > { %2787 = vmatpush.bf16.msrb.mxu2 %v4020_v54  ;;  %2800 = vmatpush.bf16.msra.mxu3 %v4028_v10 }
 0x9a4   : > { %2814 = vmatpush.bf16.msrb.mxu0 %v4035_v11  ;;  %2827 = vmatpush.bf16.msra.mxu1 %v4043_v5 }
 0x9a5   : > { %2788 = vmatpush.bf16.msrb.mxu2 %v4019_v13  ;;  %2801 = vmatpush.bf16.msra.mxu3 %v4027_v14 }
 0x9a8   : > { %2815 = vmatpush.bf16.msrb.mxu0 %v4034_v15  ;;  %2828 = vmatpush.bf16.msra.mxu1 %v4042_v36  ;;  %v4103_v36 = vld [vmem:[%s4501_s24 + $0x2b0] sm:$0xff] }
 0x9a9   : > { %2789 = vmatpush.bf16.msrb.mxu2 %v4018_v16  ;;  %2802 = vmatpush.bf16.msra.mxu3 %v4026_v17  ;;  %v4111_v16 = vld [vmem:[%s4501_s24 + $0x2f0] sm:$0xff] }
 0x9ac   : > { %2816 = vmatpush.bf16.msrb.mxu0 %v4033_v18  ;;  %2829 = vmatpush.bf16.msra.mxu1 %v4041_v19  ;;  %v4088_v19 = vld [vmem:[%s4501_s24 + $0x238] sm:$0xff] }
 0x9ad   : > { %2790 = vmatpush.bf16.msrb.mxu2 %v4017_v22  ;;  %2803 = vmatpush.bf16.msra.mxu3 %v4025_v23  ;;  %v4110_v22 = vld [vmem:[%s4501_s24 + $0x2e8] sm:$0xff] }
 0x9b0   : > { %2861 = vmatpush.bf16.msra.mxu0 %v4072_v20  ;;  %2874 = vmatpush.bf16.msrb.mxu1 %v4080_v21  ;;  %v4096_v20 = vld [vmem:[%s4501_s24 + $0x278] sm:$0xff]  ;;  %v4102_v21 = vld [vmem:[%s4501_s24 + $0x2a8] sm:$0xff] }
 0x9b1   : > { %2835 = vmatpush.bf16.msra.mxu2 %v4056_v24  ;;  %2848 = vmatpush.bf16.msrb.mxu3 %v4064_v25  ;;  %v1329_v25 = vperm.slane %v4859_v56, 6 }
 0x9b4   : > { %2862 = vmatpush.bf16.msra.mxu0 %v4071_v55  ;;  %2875 = vmatpush.bf16.msrb.mxu1 %v4079_v26  ;;  %v1330_v55 = vperm.slane %v4859_v56, 7  ;;  %v4087_v26 = vld [vmem:[%s4501_s24 + $0x230] sm:$0xff] }
 0x9b5   : > { %2836 = vmatpush.bf16.msra.mxu2 %v4055_v59  ;;  %2849 = vmatpush.bf16.msrb.mxu3 %v4063_v27  ;;  %v4095_v59 = vld [vmem:[%s4501_s24 + $0x270] sm:$0xff] }
 0x9b8   : > { %2863 = vmatpush.bf16.msra.mxu0 %v4070_v28  ;;  %2876 = vmatpush.bf16.msrb.mxu1 %v4078_v29  ;;  %v4101_v29 = vld [vmem:[%s4501_s24 + $0x2a0] sm:$0xff] }
 0x9b9   : > { %2837 = vmatpush.bf16.msra.mxu2 %v4054_v30  ;;  %2850 = vmatpush.bf16.msrb.mxu3 %v4062_v31  ;;  %v4109_v30 = vld [vmem:[%s4501_s24 + $0x2e0] sm:$0xff] }
 0x9bc   : > { %2864 = vmatpush.bf16.msra.mxu0 %v4069_v32  ;;  %2877 = vmatpush.bf16.msrb.mxu1 %v4077_v33  ;;  %v4086_v33 = vld [vmem:[%s4501_s24 + $0x228] sm:$0xff] }
 0x9bd   : > { %2838 = vmatpush.bf16.msra.mxu2 %v4053_v34  ;;  %2851 = vmatpush.bf16.msrb.mxu3 %v4061_v35  ;;  %v4094_v34 = vld [vmem:[%s4501_s24 + $0x268] sm:$0xff]  ;;  %v1327_v35 = vperm.slane %v4859_v56, 4 }
 0x9c0   : > { %2865 = vmatpush.bf16.msra.mxu0 %v4068_v37  ;;  %2878 = vmatpush.bf16.msrb.mxu1 %v4076_v38  ;;  %v1328_v37 = vperm.slane %v4859_v56, 5 }
 0x9c1   : > { %2839 = vmatpush.bf16.msra.mxu2 %v4052_v41  ;;  %2852 = vmatpush.bf16.msrb.mxu3 %v4060_v42  ;;  %v4108_v41 = vld [vmem:[%s4501_s24 + $0x2d8] sm:$0xff] }
 0x9c4   : > { %2866 = vmatpush.bf16.msra.mxu0 %v4067_v39  ;;  %2879 = vmatpush.bf16.msrb.mxu1 %v4075_v40  ;;  %v4100_v40 = vld [vmem:[%s4501_s24 + $0x298] sm:$0xff] }
 0x9c5   : > { %2840 = vmatpush.bf16.msra.mxu2 %v4051_v45  ;;  %2853 = vmatpush.bf16.msrb.mxu3 %v4059_v46 }
 0x9c8   : > { %2867 = vmatpush.bf16.msra.mxu0 %v4066_v43  ;;  %2880 = vmatpush.bf16.msrb.mxu1 %v4074_v44 }
 0x9c9   : > { %2841 = vmatpush.bf16.msra.mxu2 %v4050_v49  ;;  %2854 = vmatpush.bf16.msrb.mxu3 %v4058_v50  ;;  %v4093_v49 = vld [vmem:[%s4501_s24 + $0x260] sm:$0xff] }
 0x9cc   : > { %2868 = vmatpush.bf16.msra.mxu0 %v4065_v47  ;;  %2881 = vmatpush.bf16.msrb.mxu1 %v4073_v48  ;;  %v4085_v48 = vld [vmem:[%s4501_s24 + $0x220] sm:$0xff] }
 0x9cd   : > { %2842 = vmatpush.bf16.msra.mxu2 %v4049_v52  ;;  %2855 = vmatpush.bf16.msrb.mxu3 %v4057_v53 }
 0x9ec   : > { %v1553_v60 = vpop.f32.mrf.mxu0  ;;  %v1566_v7 = vpop.f32.mrf.mxu1 }
 0x9ed   : > { %v1554_v61 = vadd.f32 %v1553_v60, %v1325_v57  ;;  %v1567_v62 = vadd.f32 %v1566_v7, %v1326_v58  ;;  %v4099_v57 = vld [vmem:[%s4501_s24 + $0x290] sm:$0xff] }
 0x9ee   : > { %v4107_v58 = vld [vmem:[%s4501_s24 + $0x2d0] sm:$0xff] }
 0x9ef   : > { %v1728_v0 = vmax.f32 %v1554_v61, 0.0  ;;  %v1729_v1 = vmax.f32 %v1567_v62, 0.0  ;;  %v4084_v61 = vld [vmem:[%s4501_s24 + $0x218] sm:$0xff] }
 0x9f0   : > { %v4092_v62 = vld [vmem:[%s4501_s24 + $0x258] sm:$0xff] }
 0x9f1   : > { %v2000_v4 = vpack.c.bf16 %v1728_v0, %v1728_v0  ;;  %v2001_v6 = vpack.c.bf16 %v1729_v1, %v1729_v1  ;;  %v1527_v8 = vpop.f32.mrf.mxu2  ;;  %v1540_v54 = vpop.f32.mrf.mxu3  ;;  %v4106_v0 = vld [vmem:[%s4501_s24 + $0x2c8] sm:$0xff] }
 0x9f2   : > { %v1528_v10 = vadd.f32 %v1527_v8, %v1323_v51  ;;  %v1541_v11 = vadd.f32 %v1540_v54, %v1324_v63  ;;  %v4892_v51 = vld [vmem:[%s4506_s1 + $0x8] sm:$0xff]  ;;  %v4091_v8 = vld [vmem:[%s4501_s24 + $0x250] sm:$0xff]  ;;  %s3961_s1 = sshll.u32 %s4346_s28, 3  ;;  %s5029_s28 = sand.u32 1, %s4334_s25  }
 0x9f3   : > { %2817 = vmatmul.bf16.vlgmr.msrb.gmra.mxu0 %v2000_v4  ;;  %2830 = vmatmul.bf16.vlgmr.msra.gmra.mxu1 %v2001_v6  ;;  %v4098_v63 = vld [vmem:[%s4501_s24 + $0x288] sm:$0xff]  ;;  %v1334_v4 = vperm.slane %v4892_v51, 3  ;;  %v4083_v6 = vld [vmem:[%s4501_s24 + $0x210] sm:$0xff]  ;;  %s3033_s18 = scalar_lea.hbm %s5009_s7, %s3961_s1  ;;  %s3023_s23 = scalar_lea.sflag [#allocation3], %s5029_s28 }
 0x9f4   : > { %v1726_v5 = vmax.f32 %v1528_v10, 0.0  ;;  %v1727_v13 = vmax.f32 %v1541_v11, 0.0  ;;  %2913 = vmatpush.bf16.msrb.mxu0 %v4104_v2  ;;  %2926 = vmatpush.bf16.msra.mxu1 %v4112_v3  ;;  %v1555_v14 = vpop.f32.mrf.mxu0  ;;  %v1568_v15 = vpop.f32.mrf.mxu1  ;;  %v1333_v3 = vperm.slane %v4892_v51, 2  ;;  %v4097_v11 = vld [vmem:[%s4501_s24 + $0x280] sm:$0xff]  ;;  %s3037_s22 = sshll.u32 %s3033_s18, 4  ;;  %s3038_s22 = int_to_ptr.hbm [resolvable:$true] %s3037_s22 }
 0x9f5   : > { %v4136_v15 = vld [vmem:[%s4501_s24 + $0x3b8] sm:$0xff]  ;;  %s4278_s9 = sshra.s32 %s3038_s22, 4  ;;  %s4279_s9 = int_to_ptr.hbm [resolvable:$true] %s4278_s9 }
 0x9f6   : > { %v1998_v17 = vpack.c.bf16 %v1726_v5, %v1726_v5  ;;  %v1999_v18 = vpack.c.bf16 %v1727_v13, %v1727_v13  ;;  %v4105_v5 = vld [vmem:[%s4501_s24 + $0x2c0] sm:$0xff]  ;;  %s4280_s12 = scalar_lea.hbm %s4279_s9, 8  ;;  %p4285_p5 = scmp.lt.s32.totalorder %s4279_s9, %s5009_s7 }
 0x9f7   : > { %p4281_p1 = scmp.ne.s32.totalorder %s4279_s9, %s4280_s12  ;;  %p4286_p6 = scmp.lt.s32.totalorder %s4284_s30, %s4280_s12 }
 0x9f8   : > { %2914 = vmatpush.bf16.msrb.mxu0 %v4103_v36  ;;  %2927 = vmatpush.bf16.msra.mxu1 %v4111_v16  ;;  %v4144_v36 = vld [vmem:[%s4501_s24 + $0x3f8] sm:$0xff]  ;;  %v4082_v16 = vld [vmem:[%s4501_s24 + $0x208] sm:$0xff] }
 0x9f9   : > { %2791 = vmatmul.bf16.vlgmr.msrb.gmra.mxu2 %v1998_v17  ;;  %2804 = vmatmul.bf16.vlgmr.msra.gmra.mxu3 %v1999_v18  ;;  %v1529_v23 = vpop.f32.mrf.mxu2  ;;  %v1542_v24 = vpop.f32.mrf.mxu3  ;;  %v4090_v17 = vld [vmem:[%s4501_s24 + $0x248] sm:$0xff]  ;;  %v1331_v18 = vperm.slane %v4892_v51, 0  ;;  %p4282_p2 = pnand %p4281_p1, %p4456_p3  ;;  %p4287_p7 = por %p4286_p6, %p4285_p5 }
 0x9fa   : > { %2887 = vmatpush.bf16.msrb.mxu2 %v4088_v19  ;;  %2900 = vmatpush.bf16.msra.mxu3 %v4096_v20  ;;  %v1332_v19 = vperm.slane %v4892_v51, 1 }
 0x9fb   : > { %p4283_p4 = pneg %p4282_p2 }
 0x9fc   : > { %2915 = vmatpush.bf16.msrb.mxu0 %v4102_v21  ;;  %2928 = vmatpush.bf16.msra.mxu1 %v4110_v22  ;;  %v1605_v27 = vpop.f32.mrf.mxu0  ;;  %v1618_v28 = vpop.f32.mrf.mxu1 }
 0x9fd   : > { %v1606_v31 = vadd.f32 %v1605_v27, %v1329_v25  ;;  %v1619_v32 = vadd.f32 %v1618_v28, %v1330_v55  ;;  %v4135_v55 = vld [vmem:[%s4501_s24 + $0x3b0] sm:$0xff]  ;;  %v4081_v28 = vld [vmem:[%s4501_s24 + $0x200] sm:$0xff]  ;;  %p4288_p8 = pnand %p4287_p7, %p4283_p4 }
 0x9fe   : > { %2888 = vmatpush.bf16.msrb.mxu2 %v4087_v26  ;;  %2901 = vmatpush.bf16.msra.mxu3 %v4095_v59  ;;  %v4143_v26 = vld [vmem:[%s4501_s24 + $0x3f0] sm:$0xff] }
 0x9ff   : > { %v1732_v38 = vmax.f32 %v1606_v31, 0.0  ;;  %v1733_v39 = vmax.f32 %v1619_v32, 0.0  ;;  %v4128_v31 = vld [vmem:[%s4501_s24 + $0x378] sm:$0xff] }
 0xa00   : > { %2916 = vmatpush.bf16.msrb.mxu0 %v4101_v29  ;;  %2929 = vmatpush.bf16.msra.mxu1 %v4109_v30  ;;  %v4089_v29 = vld [vmem:[%s4501_s24 + $0x240] sm:$0xff]  ;;  %v4120_v30 = vld [vmem:[%s4501_s24 + $0x338] sm:$0xff] }
 0xa01   : > { %v2004_v42 = vpack.c.bf16 %v1732_v38, %v1732_v38  ;;  %v2005_v43 = vpack.c.bf16 %v1733_v39, %v1733_v39  ;;  %v1579_v44 = vpop.f32.mrf.mxu2  ;;  %v1592_v45 = vpop.f32.mrf.mxu3  ;;  %v4142_v38 = vld [vmem:[%s4501_s24 + $0x3e8] sm:$0xff] }
 0xa02   : > { %2889 = vmatpush.bf16.msrb.mxu2 %v4086_v33  ;;  %2902 = vmatpush.bf16.msra.mxu3 %v4094_v34  ;;  %v1580_v46 = vadd.f32 %v1579_v44, %v1327_v35  ;;  %v1593_v47 = vadd.f32 %v1592_v45, %v1328_v37  ;;  %v4134_v37 = vld [vmem:[%s4501_s24 + $0x3a8] sm:$0xff]  ;;  %v4133_v45 = vld [vmem:[%s4501_s24 + $0x3a0] sm:$0xff] }
 0xa03   : > { %2869 = vmatmul.bf16.vlgmr.msra.gmra.mxu0 %v2004_v42  ;;  %2882 = vmatmul.bf16.vlgmr.msrb.gmra.mxu1 %v2005_v43  ;;  %v4127_v42 = vld [vmem:[%s4501_s24 + $0x370] sm:$0xff] }
 0xa04   : > { %v1730_v50 = vmax.f32 %v1580_v46, 0.0  ;;  %v1731_v52 = vmax.f32 %v1593_v47, 0.0  ;;  %2917 = vmatpush.bf16.msrb.mxu0 %v4100_v40  ;;  %2930 = vmatpush.bf16.msra.mxu1 %v4108_v41  ;;  %v1607_v53 = vpop.f32.mrf.mxu0  ;;  %v1620_v56 = vpop.f32.mrf.mxu1  ;;  %v4119_v41 = vld [vmem:[%s4501_s24 + $0x330] sm:$0xff]  ;;  %v4141_v46 = vld [vmem:[%s4501_s24 + $0x3e0] sm:$0xff]  ;;  %v4118_v47 = vld [vmem:[%s4501_s24 + $0x328] sm:$0xff] }
 0xa05   : > { %v4140_v53 = vld [vmem:[%s4501_s24 + $0x3d8] sm:$0xff]  ;;  %v4117_v56 = vld [vmem:[%s4501_s24 + $0x320] sm:$0xff] }
 0xa06   : > { %v2002_v60 = vpack.c.bf16 %v1730_v50, %v1730_v50  ;;  %v2003_v7 = vpack.c.bf16 %v1731_v52, %v1731_v52  ;;  %2890 = vmatpush.bf16.msrb.mxu2 %v4085_v48  ;;  %2903 = vmatpush.bf16.msra.mxu3 %v4093_v49  ;;  %v4126_v48 = vld [vmem:[%s4501_s24 + $0x368] sm:$0xff]  ;;  %v4132_v52 = vld [vmem:[%s4501_s24 + $0x398] sm:$0xff] }
 0xa08   : > { %2918 = vmatpush.bf16.msrb.mxu0 %v4099_v57  ;;  %2931 = vmatpush.bf16.msra.mxu1 %v4107_v58  ;;  %v4125_v57 = vld [vmem:[%s4501_s24 + $0x360] sm:$0xff] }
 0xa09   : > { %2843 = vmatmul.bf16.vlgmr.msra.gmra.mxu2 %v2002_v60  ;;  %2856 = vmatmul.bf16.vlgmr.msrb.gmra.mxu3 %v2003_v7  ;;  %v1581_v1 = vpop.f32.mrf.mxu2  ;;  %v1594_v2 = vpop.f32.mrf.mxu3  ;;  %v4131_v7 = vld [vmem:[%s4501_s24 + $0x390] sm:$0xff] }
 0xa0a   : > { %2891 = vmatpush.bf16.msrb.mxu2 %v4084_v61  ;;  %2904 = vmatpush.bf16.msra.mxu3 %v4092_v62  ;;  %v4139_v61 = vld [vmem:[%s4501_s24 + $0x3d0] sm:$0xff]  ;;  %v1337_v62 = vperm.slane %v4892_v51, 6  ;;  %v4124_v1 = vld [vmem:[%s4501_s24 + $0x358] sm:$0xff] }
 0xa0c   : > { %2919 = vmatpush.bf16.msrb.mxu0 %v4098_v63  ;;  %2932 = vmatpush.bf16.msra.mxu1 %v4106_v0  ;;  %v1657_v54 = vpop.f32.mrf.mxu0  ;;  %v1670_v10 = vpop.f32.mrf.mxu1  ;;  %v1338_v63 = vperm.slane %v4892_v51, 7  ;;  %v4116_v0 = vld [vmem:[%s4501_s24 + $0x318] sm:$0xff] }
 0xa0d   : > { %v1658_v13 = vadd.f32 %v1657_v54, %v1333_v3  ;;  %v1671_v14 = vadd.f32 %v1670_v10, %v1334_v4  ;;  %v4130_v4 = vld [vmem:[%s4501_s24 + $0x388] sm:$0xff]  ;;  %v4115_v10 = vld [vmem:[%s4501_s24 + $0x310] sm:$0xff] }
 0xa0e   : > { %2892 = vmatpush.bf16.msrb.mxu2 %v4083_v6  ;;  %2905 = vmatpush.bf16.msra.mxu3 %v4091_v8  ;;  %v4138_v6 = vld [vmem:[%s4501_s24 + $0x3c8] sm:$0xff] }
 0xa0f   : > { %v1736_v20 = vmax.f32 %v1658_v13, 0.0  ;;  %v1737_v21 = vmax.f32 %v1671_v14, 0.0  ;;  %v1336_v13 = vperm.slane %v4892_v51, 5 }
 0xa10   : > { %2920 = vmatpush.bf16.msrb.mxu0 %v4097_v11  ;;  %2933 = vmatpush.bf16.msra.mxu1 %v4105_v5  ;;  %v4123_v11 = vld [vmem:[%s4501_s24 + $0x350] sm:$0xff]  ;;  %v1335_v5 = vperm.slane %v4892_v51, 4 }
 0xa11   : > { %v2008_v22 = vpack.c.bf16 %v1736_v20, %v1736_v20  ;;  %v2009_v23 = vpack.c.bf16 %v1737_v21, %v1737_v21  ;;  %v1631_v24 = vpop.f32.mrf.mxu2  ;;  %v1644_v25 = vpop.f32.mrf.mxu3  ;;  %v4122_v20 = vld [vmem:[%s4501_s24 + $0x348] sm:$0xff] }
 0xa12   : > { %2893 = vmatpush.bf16.msrb.mxu2 %v4082_v16  ;;  %2906 = vmatpush.bf16.msra.mxu3 %v4090_v17  ;;  %v1632_v59 = vadd.f32 %v1631_v24, %v1331_v18  ;;  %v1645_v27 = vadd.f32 %v1644_v25, %v1332_v19  ;;  %v4137_v16 = vld [vmem:[%s4501_s24 + $0x3c0] sm:$0xff]  ;;  %v4114_v19 = vld [vmem:[%s4501_s24 + $0x308] sm:$0xff] }
 0xa13   : > { %2921 = vmatmul.bf16.vlgmr.msrb.gmra.mxu0 %v2008_v22  ;;  %2934 = vmatmul.bf16.vlgmr.msra.gmra.mxu1 %v2009_v23  ;;  %v4113_v24 = vld [vmem:[%s4501_s24 + $0x300] sm:$0xff] }
 0xa14   : > { %2965 = vmatpush.bf16.msra.mxu0 %v4136_v15  ;;  %2978 = vmatpush.bf16.msrb.mxu1 %v4144_v36  ;;  %v1734_v32 = vmax.f32 %v1632_v59, 0.0  ;;  %v1735_v33 = vmax.f32 %v1645_v27, 0.0  ;;  %v1659_v34 = vpop.f32.mrf.mxu0  ;;  %v1672_v35 = vpop.f32.mrf.mxu1  ;;  %v4129_v36 = vld [vmem:[%s4501_s24 + $0x380] sm:$0xff] }
 0xa15   : > { %v4121_v25 = vld [vmem:[%s4501_s24 + $0x340] sm:$0xff] }
 0xa16   : > { %v2006_v39 = vpack.c.bf16 %v1734_v32, %v1734_v32  ;;  %v2007_v40 = vpack.c.bf16 %v1735_v33, %v1735_v33  ;;  %2894 = vmatpush.bf16.msrb.mxu2 %v4081_v28  ;;  %2907 = vmatpush.bf16.msra.mxu3 %v4089_v29 }
 0xa18   : > { %2966 = vmatpush.bf16.msra.mxu0 %v4135_v55  ;;  %2979 = vmatpush.bf16.msrb.mxu1 %v4143_v26 }
 0xa19   : > { %v1633_v43 = vpop.f32.mrf.mxu2  ;;  %v1646_v44 = vpop.f32.mrf.mxu3  ;;  %2895 = vmatmul.bf16.vlgmr.msrb.gmra.mxu2 %v2006_v39  ;;  %2908 = vmatmul.bf16.vlgmr.msra.gmra.mxu3 %v2007_v40 }
 0xa1a   : > { %2939 = vmatpush.bf16.msra.mxu2 %v4120_v30  ;;  %2952 = vmatpush.bf16.msrb.mxu3 %v4128_v31 }
 0xa1c   : > { %2967 = vmatpush.bf16.msra.mxu0 %v4134_v37  ;;  %2980 = vmatpush.bf16.msrb.mxu1 %v4142_v38  ;;  %v1709_v49 = vpop.f32.mrf.mxu0  ;;  %v1722_v50 = vpop.f32.mrf.mxu1 }
 0xa1d   : > { %v1710_v8 = vadd.f32 %v1709_v49, %v1337_v62  ;;  %v1723_v54 = vadd.f32 %v1722_v50, %v1338_v63 }
 0xa1e   : > { %2940 = vmatpush.bf16.msra.mxu2 %v4119_v41  ;;  %2953 = vmatpush.bf16.msrb.mxu3 %v4127_v42  ;;  %v4945_v41 = vld [vmem:[%s4511_s16 + $0x8] sm:$0x7f] }
 0xa1f   : > { %v1740_v17 = vmax.f32 %v1710_v8, 0.0  ;;  %v1741_v18 = vmax.f32 %v1723_v54, 0.0  ;;  %v2014_v42 = vperm.slane %v4945_v41, 0 }
 0xa20   : > { %2968 = vmatpush.bf16.msra.mxu0 %v4133_v45  ;;  %2981 = vmatpush.bf16.msrb.mxu1 %v4141_v46 }
 0xa21   : > { %v1683_v58 = vpop.f32.mrf.mxu2  ;;  %v1696_v60 = vpop.f32.mrf.mxu3  ;;  %v2012_v23 = vpack.c.bf16 %v1740_v17, %v1740_v17  ;;  %v2013_v51 = vpack.c.bf16 %v1741_v18, %v1741_v18 }
 0xa22   : > { %2941 = vmatpush.bf16.msra.mxu2 %v4118_v47  ;;  %2954 = vmatpush.bf16.msrb.mxu3 %v4126_v48  ;;  %v1684_v21 = vadd.f32 %v1683_v58, %v1335_v5  ;;  %v1697_v22 = vadd.f32 %v1696_v60, %v1336_v13 }
 0xa24   : > { %2969 = vmatpush.bf16.msra.mxu0 %v4132_v52  ;;  %2982 = vmatpush.bf16.msrb.mxu1 %v4140_v53  ;;  %v1711_v2 = vpop.f32.mrf.mxu0  ;;  %v1724_v3 = vpop.f32.mrf.mxu1  ;;  %v1738_v55 = vmax.f32 %v1684_v21, 0.0  ;;  %v1739_v26 = vmax.f32 %v1697_v22, 0.0 }
 0xa26   : > { %2942 = vmatpush.bf16.msra.mxu2 %v4117_v56  ;;  %2955 = vmatpush.bf16.msrb.mxu3 %v4125_v57  ;;  %v2010_v59 = vpack.c.bf16 %v1738_v55, %v1738_v55  ;;  %v2011_v27 = vpack.c.bf16 %v1739_v26, %v1739_v26 }
 0xa28   : > { %2970 = vmatpush.bf16.msra.mxu0 %v4131_v7  ;;  %2983 = vmatpush.bf16.msrb.mxu1 %v4139_v61 }
 0xa29   : > { %v1685_v14 = vpop.f32.mrf.mxu2  ;;  %v1698_v15 = vpop.f32.mrf.mxu3 }
 0xa2a   : > { %2943 = vmatpush.bf16.msra.mxu2 %v4116_v0  ;;  %2956 = vmatpush.bf16.msrb.mxu3 %v4124_v1 }
 0xa2c   : > { %2971 = vmatpush.bf16.msra.mxu0 %v4130_v4  ;;  %2984 = vmatpush.bf16.msrb.mxu1 %v4138_v6 }
 0xa2e   : > { %2944 = vmatpush.bf16.msra.mxu2 %v4115_v10  ;;  %2957 = vmatpush.bf16.msrb.mxu3 %v4123_v11 }
 0xa30   : > { %2972 = vmatpush.bf16.msra.mxu0 %v4129_v36  ;;  %2985 = vmatpush.bf16.msrb.mxu1 %v4137_v16 }
 0xa32   : > { %2945 = vmatpush.bf16.msra.mxu2 %v4114_v19  ;;  %2958 = vmatpush.bf16.msrb.mxu3 %v4122_v20 }
 0xa33   : > { %2973 = vmatmul.bf16.vlgmr.msra.gmra.mxu0 %v2012_v23  ;;  %2986 = vmatmul.bf16.vlgmr.msrb.gmra.mxu1 %v2013_v51 }
 0xa36   : > { %2946 = vmatpush.bf16.msra.mxu2 %v4113_v24  ;;  %2959 = vmatpush.bf16.msrb.mxu3 %v4121_v25 }
 0xa39   : > { %2947 = vmatmul.bf16.vlgmr.msra.gmra.mxu2 %v2010_v59  ;;  %2960 = vmatmul.bf16.vlgmr.msrb.gmra.mxu3 %v2011_v27 }
 0xa70   : > { %v2818_v28 = vpop.f32.mrf.mxu0  ;;  %v2831_v29 = vpop.f32.mrf.mxu1 }
 0xa78   : > { %v2820_v30 = vpop.f32.mrf.mxu0  ;;  %v2833_v31 = vpop.f32.mrf.mxu1 }
 0xa7c   : > { %v2792_v32 = vpop.f32.mrf.mxu2  ;;  %v2805_v33 = vpop.f32.mrf.mxu3 }
 0xa7d   : > { %v2793_v45 = vadd.f32 %v2792_v32, %v2014_v42 }
 0xa7f   : > { %v2806_v48 = vadd.f32 %v2805_v33, %v2793_v45 }
 0xa80   : > { %v2870_v34 = vpop.f32.mrf.mxu0  ;;  %v2883_v35 = vpop.f32.mrf.mxu1 }
 0xa81   : > { %v2819_v52 = vadd.f32 %v2818_v28, %v2806_v48 }
 0xa83   : > { %v2832_v57 = vadd.f32 %v2831_v29, %v2819_v52 }
 0xa84   : > { %v2794_v37 = vpop.f32.mrf.mxu2  ;;  %v2807_v38 = vpop.f32.mrf.mxu3 }
 0xa85   : > { %v3019_v37 = vperm.slane %v4945_v41, 6 }
 0xa88   : > { %v2872_v39 = vpop.f32.mrf.mxu0  ;;  %v2885_v40 = vpop.f32.mrf.mxu1 }
 0xa8c   : > { %v2844_v43 = vpop.f32.mrf.mxu2  ;;  %v2857_v44 = vpop.f32.mrf.mxu3 }
 0xa8d   : > { %v2845_v7 = vadd.f32 %v2844_v43, %v2832_v57 }
 0xa8f   : > { %v2858_v61 = vadd.f32 %v2857_v44, %v2845_v7 }
 0xa90   : > { %v2922_v46 = vpop.f32.mrf.mxu0  ;;  %v2935_v47 = vpop.f32.mrf.mxu1 }
 0xa91   : > { %v2871_v0 = vadd.f32 %v2870_v34, %v2858_v61 }
 0xa93   : > { %v2884_v1 = vadd.f32 %v2883_v35, %v2871_v0 }
 0xa94   : > { %v2846_v49 = vpop.f32.mrf.mxu2  ;;  %v2859_v50 = vpop.f32.mrf.mxu3 }
 0xa98   : > { %v2924_v53 = vpop.f32.mrf.mxu0  ;;  %v2937_v56 = vpop.f32.mrf.mxu1 }
 0xa9c   : > { %v2896_v58 = vpop.f32.mrf.mxu2  ;;  %v2909_v60 = vpop.f32.mrf.mxu3 }
 0xa9d   : > { %v2897_v2 = vadd.f32 %v2896_v58, %v2884_v1 }
 0xa9f   : > { %v2910_v6 = vadd.f32 %v2909_v60, %v2897_v2 }
 0xaa1   : > { %v2923_v8 = vadd.f32 %v2922_v46, %v2910_v6 }
 0xaa3   : > { %v2936_v11 = vadd.f32 %v2935_v47, %v2923_v8 }
 0xaa4   : > { %v2898_v62 = vpop.f32.mrf.mxu2  ;;  %v2911_v63 = vpop.f32.mrf.mxu3 }
 0xab0   : > { %v2974_v3 = vpop.f32.mrf.mxu0  ;;  %v2987_v4 = vpop.f32.mrf.mxu1 }
 0xab8   : > { %v2976_v54 = vpop.f32.mrf.mxu0  ;;  %v2989_v10 = vpop.f32.mrf.mxu1 }
 0xabc   : > { %v2948_v5 = vpop.f32.mrf.mxu2  ;;  %v2961_v13 = vpop.f32.mrf.mxu3 }
 0xabd   : > { %v2949_v14 = vadd.f32 %v2948_v5, %v2936_v11 }
 0xabf   : > { %v2962_v15 = vadd.f32 %v2961_v13, %v2949_v14 }
 0xac1   : > { %v2975_v36 = vadd.f32 %v2974_v3, %v2962_v15 }
 0xac3   : > { %v2988_v16 = vadd.f32 %v2987_v4, %v2975_v36 }
 0xac4   : > { %v2950_v17 = vpop.f32.mrf.mxu2  ;;  %v2963_v18 = vpop.f32.mrf.mxu3 }
 0xac5   : > { %v2991_v19 = vadd.f32 %v2988_v16, %v4729_v9 }
 0xac7   : > { %v2992_v20 = vsel %vm434_vm1, %v2991_v19, 0.0  ;;  %v2996_v21 = vmul.f32 %v2991_v19, %v2991_v19 }
 0xac8   : > { %2993 = vadd.xlane.f32.xlu0 %v2992_v20 }
 0xac9   : > { %v2997_v22 = vsel %vm434_vm1, %v2996_v21, 0.0 }
 0xad0   : > { %2998 = vadd.xlane.f32.xlu0 %v2997_v22 }
 0xb3b   : > { %v2994_v23 = vpop.xlane.xlu0 %2993 }
 0xb3c   : > { %v2995_v51 = vmul.f32 %v2994_v23, %v4601_v12 }
 0xb3e   : > { %v3001_v25 = vmul.f32 %v2995_v51, %v2995_v51  ;;  %v3004_v33 = vsub.f32 %v2991_v19, %v2995_v51 }
 0xb43   : > { %v2999_v24 = vpop.xlane.xlu0 %2998 }
 0xb44   : > { %v3000_v55 = vmul.f32 %v2999_v24, %v4601_v12  ;;  %v3017_v12 = vperm.slane %v4945_v41, 5 }
 0xb46   : > { %v3002_v26 = vsub.f32 %v3000_v55, %v3001_v25 }
 0xb48   : > { %v3003_v59 = vmax.f32 %v3002_v26, 0.0 }
 0xb4a   : > { %v3005_v27 = vadd.f32 1e-05, %v3003_v59 }
 0xb4c   : > { %4261 = vrsqrt.f32 %v3005_v27  ;;  %vm3012_vm14 = vweird.f32 %v3005_v27 }
 0xb52   : > { %v4262_v9 = vpop.eup %4261 }
 0xb53   : > { %v3007_v28 = vmul.f32 %v4262_v9, %v3005_v27  ;;  %vm3013_vm13 = vweird.f32 %v4262_v9 }
 0xb54   : > { %vm3014_vm15 = vmor %vm3012_vm14, %vm3013_vm13 }
 0xb55   : > { %v3008_v29 = vmul.f32 %v4262_v9, %v3007_v28 }
 0xb57   : > { %v3009_v30 = vmul.f32 0.5, %v3008_v29 }
 0xb59   : > { %v3010_v31 = vsub.f32 1.5, %v3009_v30 }
 0xb5b   : > { %v3011_v32 = vmul.f32 %v4262_v9, %v3010_v31 }
 0xb5d   : > { %v3015_v34 = vsel %vm3014_vm15, %v4262_v9, %v3011_v32 }
 0xb5e   : > { %v3016_v35 = vmul.f32 %v3015_v34, %v3004_v33 }
 0xb60   : > { %v3018_v38 = vmul.f32 %v3017_v12, %v3016_v35 }
 0xb62   : > { %v3020_v39 = vadd.f32 %v3019_v37, %v3018_v38 }
 0xb64   : > { %3021 = vst.msk [vmem:[%s4513_s29] sm:$0xff] %vm434_vm1, %v3020_v39 }
 0xb65   : > { %4291 = shalt.err (!%p4288_p8)
}
 0xb66   : > { %4145 = dma.vmem_to_hbm [thread:$0]  (%p4456_p3), %s3036_s10, 128, %s3038_s22, %s3023_s23  }
 0xb67 PF: > { %s5030_s29 = sld [smem:[#allocation5_spill]]  ;;  %p4151_p10 = scmp.ge.s32.totalorder %s4358_s8, 2 }
 0xb69   : > { %p4148_p11 = pnand %p4151_p10, %p4466_p9 }
 0xb6b   : > { %p4149_p12 = pneg %p4148_p11 }
 0xb6d   : > { %s3049_s17 = sand.u32 1, %s5030_s29  }
 0xb6e   : > { %s3050_s19 = scalar_lea.sflag [#allocation3], %s3049_s17 }
 0xb6f   : > { %4325 = dma.done.wait (%p4149_p12), %s3050_s19, 128  }
 0xb70   : > { %4327 = vsyncadd (%p4149_p12), %s3050_s19, 4294967168  ;;  %s20_s8 = sadd.s32 1, %s4358_s8   ;;  %s5032_s21 = sld [smem:[#allocation6_spill]] }
 0xb71   : > { %p17_p13 = scmp.ge.s32.totalorder %s20_s8, 6   ;;  %s5033_s26 = sld [smem:[#allocation12_spill]] }
 0xb72   : > { %s5034_s27 = sld [smem:[#allocation7_spill]]  ;;  %s5038_s24 = smov %s4334_s25 }
 0xb73   : > { %s5035_s28 = sld [smem:[#allocation8_spill]]  ;;  %19 = sbr.rel (!%p17_p13) target bundleno = 7 (0x7), region = 109 }
 0xb74   : > { %s5036_s29 = sld [smem:[#allocation9_spill]] }
 0xb75   : > { %s5037_s30 = sld [smem:[#allocation10_spill]] }
 0xb76   : > { %s5039_s25 = smov %s5032_s21 }
 0xb78   :  { %3056 = vsyncpa [#allocation3], 1 }
 0xb79   :  { %3058 = vsyncpa [#allocation3 + $0x1], 1 }

</bundles_post_ra>
